<compile_context>
chip_gen: v7x
topology: tpu7x:2x2x1
jax: 0.10.0
libtpu: 0.0.40
codegen_flags: <defaults>
</compile_context>

<pallas_src>
import functools

import jax
import jax.numpy as jnp
from jax.experimental import pallas as pl
from jax.experimental.pallas import tpu as pltpu


def _round_up(x, m):
    return (x + m - 1) // m * m


def _vmem_limit(*block_bytes):
    # Double-buffered blocks + slack, clamped between the scoped defaults and
    # ~3/4 of physical VMEM (64 MiB on v7x, 128 MiB on v5e/v6e).
    need = 2 * sum(int(b) for b in block_bytes) + (4 << 20)
    try:
        cap = int(pltpu.get_tpu_info().vmem_capacity_bytes) * 3 // 4
    except Exception:  # pragma: no cover - conservative fallback (v7x-safe)
        cap = 48 << 20
    return int(min(max(need, 32 << 20), cap))


# ---------------------------------------------------------------------------
# Kernel 1: conv (sum of K*K shifted matmuls) + per-tile InstanceNorm partials
# ---------------------------------------------------------------------------
def _conv_kernel(x_ref, w_ref, y_ref, stats_ref, *, ksize, stride, tile_rows, wo, ho):
    # x_ref:     (1, s*s, A, B, Cinp)  bf16  phase-split padded input (resident per batch)
    # w_ref:     (K*K, Cinp, Coutp)    bf16  resident weights
    # y_ref:     (1, TR, Wo, Coutp)    f32   pre-norm conv output tile
    # stats_ref: (1, 1, 2, Coutp)      f32   per-tile [sum, sum_of_squares]
    s = stride
    cinp = x_ref.shape[-1]
    coutp = w_ref.shape[-1]
    row0 = pl.multiple_of(pl.program_id(1) * tile_rows, tile_rows)

    acc = jnp.zeros((tile_rows * wo, coutp), jnp.float32)
    for ki in range(ksize):
        ai, pi = ki // s, ki % s
        for kj in range(ksize):
            aj, pj = kj // s, kj % s
            phase = pi * s + pj
            x_tap = x_ref[0, phase, pl.ds(row0 + ai, tile_rows), pl.ds(aj, wo), :]
            acc += jnp.dot(
                x_tap.reshape(tile_rows * wo, cinp),
                w_ref[ki * ksize + kj],
                preferred_element_type=jnp.float32,
            )
    # No bias add: Conv2d bias is exactly cancelled by affine=False InstanceNorm2d.

    acc3 = acc.reshape(tile_rows, wo, coutp)
    y_ref[0] = acc3.astype(y_ref.dtype)

    # Rows past Ho (tile padding) must not pollute the InstanceNorm statistics.
    valid = (row0 + jax.lax.broadcasted_iota(jnp.int32, (tile_rows, 1, 1), 0)) < ho
    acc_v = jnp.where(valid, acc3, 0.0).reshape(tile_rows * wo, coutp)
    ssum = jnp.sum(acc_v, axis=0, keepdims=True)            # (1, Coutp)
    ssq = jnp.sum(acc_v * acc_v, axis=0, keepdims=True)      # (1, Coutp)
    stats_ref[0, 0] = jnp.concatenate([ssum, ssq], axis=0)   # (2, Coutp)


# ---------------------------------------------------------------------------
# Kernel 2: finalize InstanceNorm (per-instance, per-channel) + ReLU
# ---------------------------------------------------------------------------
def _norm_kernel(y_ref, tot_ref, o_ref, *, inv_count, eps, use_act):
    # y_ref:   (1, TR, Wo, Coutp)  f32   pre-norm conv tile
    # tot_ref: (1, 2, Coutp)       f32   per-(n, channel) [sum, sum_of_squares]
    tot = tot_ref[0]                                   # (2, Coutp)
    mean = tot[0:1, :] * inv_count                     # (1, Coutp)
    var = jnp.maximum(tot[1:2, :] * inv_count - mean * mean, 0.0)
    inv_std = jax.lax.rsqrt(var + eps)                 # EUP rsqrt
    out = (y_ref[0] - mean) * inv_std
    if use_act:
        out = jnp.maximum(out, 0.0)                    # nn.ReLU
    o_ref[0] = out.astype(o_ref.dtype)


# ---------------------------------------------------------------------------
# Wrapper: ConvBlock forward (NCHW in, NCHW out, matching the PyTorch module)
# ---------------------------------------------------------------------------
def conv_block(x_nchw, weight, bias=None, *, stride=1, padding=1, down=True,
               use_act=True, eps=1e-5, tile_rows=None):
    if not down:
        # TODO(synk): down=False (nn.ConvTranspose2d) branch not implemented in Pallas.
        raise NotImplementedError("ConvBlock(down=False) is not implemented")
    del bias  # cancelled exactly by the affine=False InstanceNorm2d that follows

    n, cin, h, w = x_nchw.shape
    cout, cin_w, k, k2 = weight.shape
    assert cin == cin_w and k == k2, "weight must be (Cout, Cin, K, K) matching x"
    s = int(stride)
    padding = int(padding)
    ho = (h + 2 * padding - k) // s + 1
    wo = (w + 2 * padding - k) // s + 1
    assert ho > 0 and wo > 0

    cinp = _round_up(cin, 128)    # lane-dense loads, MXU-friendly contraction
    coutp = _round_up(cout, 128)  # lane-dense (unmasked) stores

    if tile_rows is None:
        tile_rows = max(1, 2048 // max(wo, 1))   # ~2K output positions / tile
    tile_rows = min(int(tile_rows), ho)
    n_row_tiles = pl.cdiv(ho, tile_rows)
    y_rows = n_row_tiles * tile_rows

    # ---- glue: NCHW -> NHWC, reflect pad, phase split for stride, channel pad.
    x = jnp.transpose(x_nchw, (0, 2, 3, 1)).astype(jnp.float32)
    x = jnp.pad(x, ((0, 0), (padding, padding), (padding, padding), (0, 0)),
                mode="reflect")
    halo = (k - 1) // s
    a_dim = y_rows + halo
    b_dim = wo + halo
    hp, wp = x.shape[1], x.shape[2]
    x = jnp.pad(x, ((0, 0), (0, max(0, a_dim * s - hp)),
                    (0, max(0, b_dim * s - wp)), (0, cinp - cin)))
    x = x[:, :a_dim * s, :b_dim * s, :]
    x_ps = x.reshape(n, a_dim, s, b_dim, s, cinp).transpose(0, 2, 4, 1, 3, 5)
    x_ps = x_ps.reshape(n, s * s, a_dim, b_dim, cinp).astype(jnp.bfloat16)

    # weights: (Cout, Cin, K, K) -> (K*K, Cinp, Coutp), bf16
    w_p = jnp.transpose(weight, (2, 3, 1, 0)).reshape(k * k, cin, cout)
    w_p = jnp.pad(w_p, ((0, 0), (0, cinp - cin), (0, coutp - cout))).astype(jnp.bfloat16)

    # ---- pass 1: conv + per-tile statistics -------------------------------
    x_blk = s * s * a_dim * b_dim * cinp * 2
    w_blk = k * k * cinp * coutp * 2
    y_blk = tile_rows * wo * coutp * 4
    st_blk = 2 * coutp * 4
    conv_cost = pl.CostEstimate(
        flops=2 * n * y_rows * wo * cinp * coutp * k * k,
        transcendentals=0,
        bytes_accessed=(x_ps.size * 2 + w_p.size * 2
                        + n * y_rows * wo * coutp * 4
                        + n * n_row_tiles * 2 * coutp * 4),
    )
    conv_kernel = functools.partial(
        _conv_kernel, ksize=k, stride=s, tile_rows=tile_rows, wo=wo, ho=ho)
    y_conv, stats = pl.pallas_call(
        conv_kernel,
        out_shape=(jax.ShapeDtypeStruct((n, y_rows, wo, coutp), jnp.float32),
                   jax.ShapeDtypeStruct((n, n_row_tiles, 2, coutp), jnp.float32)),
        grid=(n, n_row_tiles),
        in_specs=[
            pl.BlockSpec((1, s * s, a_dim, b_dim, cinp),
                         lambda i, t: (i, 0, 0, 0, 0)),       # resident per batch
            pl.BlockSpec((k * k, cinp, coutp), lambda i, t: (0, 0, 0)),  # resident
        ],
        out_specs=(
            pl.BlockSpec((1, tile_rows, wo, coutp), lambda i, t: (i, t, 0, 0)),
            pl.BlockSpec((1, 1, 2, coutp), lambda i, t: (i, t, 0, 0)),
        ),
        compiler_params=pltpu.CompilerParams(
            dimension_semantics=("parallel", "parallel"),
            vmem_limit_bytes=_vmem_limit(x_blk, w_blk, y_blk, st_blk)),
        cost_estimate=conv_cost,
    )(x_ps, w_p)

    # tiny reduction of the per-tile partials: (N, HT, 2, Coutp) -> (N, 2, Coutp)
    totals = jnp.sum(stats, axis=1)

    # ---- pass 2: InstanceNorm finalize + ReLU ------------------------------
    norm_cost = pl.CostEstimate(
        flops=6 * n * y_rows * wo * coutp,
        transcendentals=n * n_row_tiles * coutp,
        bytes_accessed=2 * n * y_rows * wo * coutp * 4 + n * 2 * coutp * 4,
    )
    norm_kernel = functools.partial(
        _norm_kernel, inv_count=1.0 / float(ho * wo), eps=float(eps),
        use_act=bool(use_act))
    out = pl.pallas_call(
        norm_kernel,
        out_shape=jax.ShapeDtypeStruct((n, y_rows, wo, coutp), jnp.float32),
        grid=(n, n_row_tiles),
        in_specs=[
            pl.BlockSpec((1, tile_rows, wo, coutp), lambda i, t: (i, t, 0, 0)),
            pl.BlockSpec((1, 2, coutp), lambda i, t: (i, 0, 0)),
        ],
        out_specs=pl.BlockSpec((1, tile_rows, wo, coutp), lambda i, t: (i, t, 0, 0)),
        compiler_params=pltpu.CompilerParams(
            dimension_semantics=("parallel", "parallel"),
            vmem_limit_bytes=_vmem_limit(y_blk, st_blk, y_blk)),
        cost_estimate=norm_cost,
    )(y_conv, totals)

    # glue: crop channel / row padding, back to NCHW to match the PyTorch module.
    return jnp.transpose(out[:, :ho, :, :cout], (0, 3, 1, 2))


# ---------------------------------------------------------------------------
# Pure-JAX reference (test harness only) and demo
# ---------------------------------------------------------------------------
def _conv_block_reference(x, w, *, stride, padding, use_act, eps=1e-5):
    xp = jnp.pad(x, ((0, 0), (0, 0), (padding, padding), (padding, padding)),
                 mode="reflect")
    y = jax.lax.conv_general_dilated(
        xp, w, window_strides=(stride, stride), padding="VALID",
        dimension_numbers=("NCHW", "OIHW", "NCHW"),
        precision=jax.lax.Precision.HIGHEST)
    mean = y.mean(axis=(2, 3), keepdims=True)
    var = ((y - mean) ** 2).mean(axis=(2, 3), keepdims=True)
    y = (y - mean) * jax.lax.rsqrt(var + eps)
    return jnp.maximum(y, 0.0) if use_act else y


def _bf16_round(a):
    return a.astype(jnp.bfloat16).astype(jnp.float32)


if __name__ == "__main__":
    key = jax.random.PRNGKey(0)
    k1, k2, k3, k4 = jax.random.split(key, 4)

    # ConvBlock(4, 32, kernel_size=3, stride=1, padding=1) on x: (2, 4, 16, 16)
    x = jax.random.normal(k1, (2, 4, 16, 16), jnp.float32)
    w1 = 0.1 * jax.random.normal(k2, (32, 4, 3, 3), jnp.float32)
    b1 = 0.1 * jax.random.normal(k3, (32,), jnp.float32)
    out1 = conv_block(x, w1, b1, stride=1, padding=1, use_act=True, tile_rows=8)
    out1 = jax.block_until_ready(out1)
    assert out1.shape == (2, 32, 16, 16), out1.shape
    assert bool(jnp.all(out1 >= 0.0)) and bool(jnp.all(jnp.isfinite(out1)))
    ref1 = _conv_block_reference(_bf16_round(x), _bf16_round(w1),
                                 stride=1, padding=1, use_act=True)
    assert float(jnp.max(jnp.abs(out1 - ref1))) < 5e-2

    # Down-sampling ConvBlock(32, 64, kernel_size=3, stride=2, padding=1)
    w2 = 0.1 * jax.random.normal(k4, (64, 32, 3, 3), jnp.float32)
    out2 = conv_block(out1, w2, None, stride=2, padding=1, use_act=True)
    out2 = jax.block_until_ready(out2)
    assert out2.shape == (2, 64, 8, 8), out2.shape
    assert bool(jnp.all(out2 >= 0.0)) and bool(jnp.all(jnp.isfinite(out2)))
    ref2 = _conv_block_reference(_bf16_round(out1), _bf16_round(w2),
                                 stride=2, padding=1, use_act=True)
    assert float(jnp.max(jnp.abs(out2 - ref2))) < 5e-2

    print("KERNEL_OK")
</pallas_src>

<mosaic_0001>
module attributes {stable_mosaic.version = 11 : i64} {
  func.func @_conv_kernel(%arg0: i32, %arg1: i32, %arg2: memref<1x1x18x18x128xbf16, #tpu.memory_space<vmem>>, %arg3: memref<9x128x128xbf16, #tpu.memory_space<vmem>>, %arg4: memref<1x8x16x128xf32, #tpu.memory_space<vmem>>, %arg5: memref<1x1x2x128xf32, #tpu.memory_space<vmem>>) attributes {dimension_semantics = [#tpu.dimension_semantics<parallel>, #tpu.dimension_semantics<parallel>], iteration_bounds = array<i64: 2, 2>, scalar_prefetch = 0 : i64, scratch_operands = 0 : i64, tpu.core_type = #tpu.core_type<tc>, window_params = [{transform_indices = @transform_0, window_bounds = array<i64: 1, 1, 18, 18, 128>}, {pipeline_mode = #tpu.pipeline_mode<synchronous>, transform_indices = @transform_1, window_bounds = array<i64: 9, 128, 128>}, {transform_indices = @transform_2, window_bounds = array<i64: 1, 8, 16, 128>}, {transform_indices = @transform_3, window_bounds = array<i64: 1, 1, 2, 128>}]} {
    %c8_i32 = arith.constant 8 : i32
    %0 = arith.muli %arg1, %c8_i32 : i32
    %1 = tpu.assume_multiple %0, 8 : i32
    %cst = arith.constant 0.000000e+00 : f32
    %2 = vector.broadcast %cst : f32 to vector<128x128xf32>
    %c0_i32 = arith.constant 0 : i32
    %3 = arith.addi %1, %c0_i32 : i32
    %c0 = arith.constant 0 : index
    %c0_0 = arith.constant 0 : index
    %4 = arith.index_cast %3 : i32 to index
    %c0_1 = arith.constant 0 : index
    %c0_2 = arith.constant 0 : index
    %5 = vector.load %arg2[%c0, %c0_0, %4, %c0_1, %c0_2] : memref<1x1x18x18x128xbf16, #tpu.memory_space<vmem>>, vector<1x1x8x16x128xbf16>
    %6 = vector.shape_cast %5 : vector<1x1x8x16x128xbf16> to vector<8x16x128xbf16>
    %7 = vector.shape_cast %6 : vector<8x16x128xbf16> to vector<128x128xbf16>
    %c0_3 = arith.constant 0 : index
    %c0_4 = arith.constant 0 : index
    %c0_5 = arith.constant 0 : index
    %8 = vector.load %arg3[%c0_3, %c0_4, %c0_5] : memref<9x128x128xbf16, #tpu.memory_space<vmem>>, vector<1x128x128xbf16>
    %9 = vector.shape_cast %8 : vector<1x128x128xbf16> to vector<128x128xbf16>
    %cst_6 = arith.constant dense<0.000000e+00> : vector<128x128xf32>
    %10 = tpu.matmul %7, %9, %cst_6 {dimension_numbers = #tpu.dot_dimension_numbers<[1], [0], [0], [1], [0, 0, 1, 1], [], []>} : vector<128x128xbf16>, vector<128x128xbf16>, vector<128x128xf32> -> vector<128x128xf32>
    %11 = arith.addf %2, %10 : vector<128x128xf32>
    %c0_i32_7 = arith.constant 0 : i32
    %12 = arith.addi %1, %c0_i32_7 : i32
    %c0_8 = arith.constant 0 : index
    %c0_9 = arith.constant 0 : index
    %13 = arith.index_cast %12 : i32 to index
    %c1 = arith.constant 1 : index
    %c0_10 = arith.constant 0 : index
    %14 = vector.load %arg2[%c0_8, %c0_9, %13, %c1, %c0_10] : memref<1x1x18x18x128xbf16, #tpu.memory_space<vmem>>, vector<1x1x8x16x128xbf16>
    %15 = vector.shape_cast %14 : vector<1x1x8x16x128xbf16> to vector<8x16x128xbf16>
    %16 = vector.shape_cast %15 : vector<8x16x128xbf16> to vector<128x128xbf16>
    %c1_11 = arith.constant 1 : index
    %c0_12 = arith.constant 0 : index
    %c0_13 = arith.constant 0 : index
    %17 = vector.load %arg3[%c1_11, %c0_12, %c0_13] : memref<9x128x128xbf16, #tpu.memory_space<vmem>>, vector<1x128x128xbf16>
    %18 = vector.shape_cast %17 : vector<1x128x128xbf16> to vector<128x128xbf16>
    %cst_14 = arith.constant dense<0.000000e+00> : vector<128x128xf32>
    %19 = tpu.matmul %16, %18, %cst_14 {dimension_numbers = #tpu.dot_dimension_numbers<[1], [0], [0], [1], [0, 0, 1, 1], [], []>} : vector<128x128xbf16>, vector<128x128xbf16>, vector<128x128xf32> -> vector<128x128xf32>
    %20 = arith.addf %11, %19 : vector<128x128xf32>
    %c0_i32_15 = arith.constant 0 : i32
    %21 = arith.addi %1, %c0_i32_15 : i32
    %c0_16 = arith.constant 0 : index
    %c0_17 = arith.constant 0 : index
    %22 = arith.index_cast %21 : i32 to index
    %c2 = arith.constant 2 : index
    %c0_18 = arith.constant 0 : index
    %23 = vector.load %arg2[%c0_16, %c0_17, %22, %c2, %c0_18] : memref<1x1x18x18x128xbf16, #tpu.memory_space<vmem>>, vector<1x1x8x16x128xbf16>
    %24 = vector.shape_cast %23 : vector<1x1x8x16x128xbf16> to vector<8x16x128xbf16>
    %25 = vector.shape_cast %24 : vector<8x16x128xbf16> to vector<128x128xbf16>
    %c2_19 = arith.constant 2 : index
    %c0_20 = arith.constant 0 : index
    %c0_21 = arith.constant 0 : index
    %26 = vector.load %arg3[%c2_19, %c0_20, %c0_21] : memref<9x128x128xbf16, #tpu.memory_space<vmem>>, vector<1x128x128xbf16>
    %27 = vector.shape_cast %26 : vector<1x128x128xbf16> to vector<128x128xbf16>
    %cst_22 = arith.constant dense<0.000000e+00> : vector<128x128xf32>
    %28 = tpu.matmul %25, %27, %cst_22 {dimension_numbers = #tpu.dot_dimension_numbers<[1], [0], [0], [1], [0, 0, 1, 1], [], []>} : vector<128x128xbf16>, vector<128x128xbf16>, vector<128x128xf32> -> vector<128x128xf32>
    %29 = arith.addf %20, %28 : vector<128x128xf32>
    %c1_i32 = arith.constant 1 : i32
    %30 = arith.addi %1, %c1_i32 : i32
    %c0_23 = arith.constant 0 : index
    %c0_24 = arith.constant 0 : index
    %31 = arith.index_cast %30 : i32 to index
    %c0_25 = arith.constant 0 : index
    %c0_26 = arith.constant 0 : index
    %32 = vector.load %arg2[%c0_23, %c0_24, %31, %c0_25, %c0_26] : memref<1x1x18x18x128xbf16, #tpu.memory_space<vmem>>, vector<1x1x8x16x128xbf16>
    %33 = vector.shape_cast %32 : vector<1x1x8x16x128xbf16> to vector<8x16x128xbf16>
    %34 = vector.shape_cast %33 : vector<8x16x128xbf16> to vector<128x128xbf16>
    %c3 = arith.constant 3 : index
    %c0_27 = arith.constant 0 : index
    %c0_28 = arith.constant 0 : index
    %35 = vector.load %arg3[%c3, %c0_27, %c0_28] : memref<9x128x128xbf16, #tpu.memory_space<vmem>>, vector<1x128x128xbf16>
    %36 = vector.shape_cast %35 : vector<1x128x128xbf16> to vector<128x128xbf16>
    %cst_29 = arith.constant dense<0.000000e+00> : vector<128x128xf32>
    %37 = tpu.matmul %34, %36, %cst_29 {dimension_numbers = #tpu.dot_dimension_numbers<[1], [0], [0], [1], [0, 0, 1, 1], [], []>} : vector<128x128xbf16>, vector<128x128xbf16>, vector<128x128xf32> -> vector<128x128xf32>
    %38 = arith.addf %29, %37 : vector<128x128xf32>
    %c1_i32_30 = arith.constant 1 : i32
    %39 = arith.addi %1, %c1_i32_30 : i32
    %c0_31 = arith.constant 0 : index
    %c0_32 = arith.constant 0 : index
    %40 = arith.index_cast %39 : i32 to index
    %c1_33 = arith.constant 1 : index
    %c0_34 = arith.constant 0 : index
    %41 = vector.load %arg2[%c0_31, %c0_32, %40, %c1_33, %c0_34] : memref<1x1x18x18x128xbf16, #tpu.memory_space<vmem>>, vector<1x1x8x16x128xbf16>
    %42 = vector.shape_cast %41 : vector<1x1x8x16x128xbf16> to vector<8x16x128xbf16>
    %43 = vector.shape_cast %42 : vector<8x16x128xbf16> to vector<128x128xbf16>
    %c4 = arith.constant 4 : index
    %c0_35 = arith.constant 0 : index
    %c0_36 = arith.constant 0 : index
    %44 = vector.load %arg3[%c4, %c0_35, %c0_36] : memref<9x128x128xbf16, #tpu.memory_space<vmem>>, vector<1x128x128xbf16>
    %45 = vector.shape_cast %44 : vector<1x128x128xbf16> to vector<128x128xbf16>
    %cst_37 = arith.constant dense<0.000000e+00> : vector<128x128xf32>
    %46 = tpu.matmul %43, %45, %cst_37 {dimension_numbers = #tpu.dot_dimension_numbers<[1], [0], [0], [1], [0, 0, 1, 1], [], []>} : vector<128x128xbf16>, vector<128x128xbf16>, vector<128x128xf32> -> vector<128x128xf32>
    %47 = arith.addf %38, %46 : vector<128x128xf32>
    %c1_i32_38 = arith.constant 1 : i32
    %48 = arith.addi %1, %c1_i32_38 : i32
    %c0_39 = arith.constant 0 : index
    %c0_40 = arith.constant 0 : index
    %49 = arith.index_cast %48 : i32 to index
    %c2_41 = arith.constant 2 : index
    %c0_42 = arith.constant 0 : index
    %50 = vector.load %arg2[%c0_39, %c0_40, %49, %c2_41, %c0_42] : memref<1x1x18x18x128xbf16, #tpu.memory_space<vmem>>, vector<1x1x8x16x128xbf16>
    %51 = vector.shape_cast %50 : vector<1x1x8x16x128xbf16> to vector<8x16x128xbf16>
    %52 = vector.shape_cast %51 : vector<8x16x128xbf16> to vector<128x128xbf16>
    %c5 = arith.constant 5 : index
    %c0_43 = arith.constant 0 : index
    %c0_44 = arith.constant 0 : index
    %53 = vector.load %arg3[%c5, %c0_43, %c0_44] : memref<9x128x128xbf16, #tpu.memory_space<vmem>>, vector<1x128x128xbf16>
    %54 = vector.shape_cast %53 : vector<1x128x128xbf16> to vector<128x128xbf16>
    %cst_45 = arith.constant dense<0.000000e+00> : vector<128x128xf32>
    %55 = tpu.matmul %52, %54, %cst_45 {dimension_numbers = #tpu.dot_dimension_numbers<[1], [0], [0], [1], [0, 0, 1, 1], [], []>} : vector<128x128xbf16>, vector<128x128xbf16>, vector<128x128xf32> -> vector<128x128xf32>
    %56 = arith.addf %47, %55 : vector<128x128xf32>
    %c2_i32 = arith.constant 2 : i32
    %57 = arith.addi %1, %c2_i32 : i32
    %c0_46 = arith.constant 0 : index
    %c0_47 = arith.constant 0 : index
    %58 = arith.index_cast %57 : i32 to index
    %c0_48 = arith.constant 0 : index
    %c0_49 = arith.constant 0 : index
    %59 = vector.load %arg2[%c0_46, %c0_47, %58, %c0_48, %c0_49] : memref<1x1x18x18x128xbf16, #tpu.memory_space<vmem>>, vector<1x1x8x16x128xbf16>
    %60 = vector.shape_cast %59 : vector<1x1x8x16x128xbf16> to vector<8x16x128xbf16>
    %61 = vector.shape_cast %60 : vector<8x16x128xbf16> to vector<128x128xbf16>
    %c6 = arith.constant 6 : index
    %c0_50 = arith.constant 0 : index
    %c0_51 = arith.constant 0 : index
    %62 = vector.load %arg3[%c6, %c0_50, %c0_51] : memref<9x128x128xbf16, #tpu.memory_space<vmem>>, vector<1x128x128xbf16>
    %63 = vector.shape_cast %62 : vector<1x128x128xbf16> to vector<128x128xbf16>
    %cst_52 = arith.constant dense<0.000000e+00> : vector<128x128xf32>
    %64 = tpu.matmul %61, %63, %cst_52 {dimension_numbers = #tpu.dot_dimension_numbers<[1], [0], [0], [1], [0, 0, 1, 1], [], []>} : vector<128x128xbf16>, vector<128x128xbf16>, vector<128x128xf32> -> vector<128x128xf32>
    %65 = arith.addf %56, %64 : vector<128x128xf32>
    %c2_i32_53 = arith.constant 2 : i32
    %66 = arith.addi %1, %c2_i32_53 : i32
    %c0_54 = arith.constant 0 : index
    %c0_55 = arith.constant 0 : index
    %67 = arith.index_cast %66 : i32 to index
    %c1_56 = arith.constant 1 : index
    %c0_57 = arith.constant 0 : index
    %68 = vector.load %arg2[%c0_54, %c0_55, %67, %c1_56, %c0_57] : memref<1x1x18x18x128xbf16, #tpu.memory_space<vmem>>, vector<1x1x8x16x128xbf16>
    %69 = vector.shape_cast %68 : vector<1x1x8x16x128xbf16> to vector<8x16x128xbf16>
    %70 = vector.shape_cast %69 : vector<8x16x128xbf16> to vector<128x128xbf16>
    %c7 = arith.constant 7 : index
    %c0_58 = arith.constant 0 : index
    %c0_59 = arith.constant 0 : index
    %71 = vector.load %arg3[%c7, %c0_58, %c0_59] : memref<9x128x128xbf16, #tpu.memory_space<vmem>>, vector<1x128x128xbf16>
    %72 = vector.shape_cast %71 : vector<1x128x128xbf16> to vector<128x128xbf16>
    %cst_60 = arith.constant dense<0.000000e+00> : vector<128x128xf32>
    %73 = tpu.matmul %70, %72, %cst_60 {dimension_numbers = #tpu.dot_dimension_numbers<[1], [0], [0], [1], [0, 0, 1, 1], [], []>} : vector<128x128xbf16>, vector<128x128xbf16>, vector<128x128xf32> -> vector<128x128xf32>
    %74 = arith.addf %65, %73 : vector<128x128xf32>
    %c2_i32_61 = arith.constant 2 : i32
    %75 = arith.addi %1, %c2_i32_61 : i32
    %c0_62 = arith.constant 0 : index
    %c0_63 = arith.constant 0 : index
    %76 = arith.index_cast %75 : i32 to index
    %c2_64 = arith.constant 2 : index
    %c0_65 = arith.constant 0 : index
    %77 = vector.load %arg2[%c0_62, %c0_63, %76, %c2_64, %c0_65] : memref<1x1x18x18x128xbf16, #tpu.memory_space<vmem>>, vector<1x1x8x16x128xbf16>
    %78 = vector.shape_cast %77 : vector<1x1x8x16x128xbf16> to vector<8x16x128xbf16>
    %79 = vector.shape_cast %78 : vector<8x16x128xbf16> to vector<128x128xbf16>
    %c8 = arith.constant 8 : index
    %c0_66 = arith.constant 0 : index
    %c0_67 = arith.constant 0 : index
    %80 = vector.load %arg3[%c8, %c0_66, %c0_67] : memref<9x128x128xbf16, #tpu.memory_space<vmem>>, vector<1x128x128xbf16>
    %81 = vector.shape_cast %80 : vector<1x128x128xbf16> to vector<128x128xbf16>
    %cst_68 = arith.constant dense<0.000000e+00> : vector<128x128xf32>
    %82 = tpu.matmul %79, %81, %cst_68 {dimension_numbers = #tpu.dot_dimension_numbers<[1], [0], [0], [1], [0, 0, 1, 1], [], []>} : vector<128x128xbf16>, vector<128x128xbf16>, vector<128x128xf32> -> vector<128x128xf32>
    %83 = arith.addf %74, %82 : vector<128x128xf32>
    %84 = vector.shape_cast %83 : vector<128x128xf32> to vector<8x16x128xf32>
    %c0_69 = arith.constant 0 : index
    %c0_70 = arith.constant 0 : index
    %c0_71 = arith.constant 0 : index
    %c0_72 = arith.constant 0 : index
    %85 = vector.load %arg4[%c0_69, %c0_70, %c0_71, %c0_72] : memref<1x8x16x128xf32, #tpu.memory_space<vmem>>, vector<1x8x16x128xf32>
    %86 = vector.shape_cast %85 : vector<1x8x16x128xf32> to vector<8x16x128xf32>
    %87 = vector.shape_cast %84 : vector<8x16x128xf32> to vector<1x8x16x128xf32>
    tpu.vector_store %arg4[%c0_69, %c0_70, %c0_71, %c0_72], %87 {strides = array<i32>} : memref<1x8x16x128xf32, #tpu.memory_space<vmem>>, vector<1x8x16x128xf32>,
    %88 = tpu.iota {dimensions = array<i32: 0>} : vector<8x1x1xi32>
    %89 = vector.broadcast %1 : i32 to vector<8x1x1xi32>
    %90 = arith.addi %89, %88 : vector<8x1x1xi32>
    %c16_i32 = arith.constant 16 : i32
    %91 = vector.broadcast %c16_i32 : i32 to vector<8x1x1xi32>
    %92 = arith.cmpi slt, %90, %91 : vector<8x1x1xi32>
    %cst_73 = arith.constant 0.000000e+00 : f32
    %93 = vector.shape_cast %92 : vector<8x1x1xi1> to vector<8x1x1xi1>
    %94 = vector.broadcast %93 : vector<8x1x1xi1> to vector<8x16x128xi1>
    %95 = vector.broadcast %cst_73 : f32 to vector<8x16x128xf32>
    %96 = arith.select %94, %84, %95 : vector<8x16x128xi1>, vector<8x16x128xf32>
    %97 = vector.shape_cast %96 : vector<8x16x128xf32> to vector<128x128xf32>
    %cst_74 = arith.constant dense<0.000000e+00> : vector<128xf32>
    %98 = vector.multi_reduction <add>, %97, %cst_74 [0] : vector<128x128xf32> to vector<128xf32>
    %99 = vector.shape_cast %98 : vector<128xf32> to vector<1x128xf32>
    %100 = arith.mulf %97, %97 : vector<128x128xf32>
    %cst_75 = arith.constant dense<0.000000e+00> : vector<128xf32>
    %101 = vector.multi_reduction <add>, %100, %cst_75 [0] : vector<128x128xf32> to vector<128xf32>
    %102 = vector.shape_cast %101 : vector<128xf32> to vector<1x128xf32>
    %103 = tpu.concatenate %99, %102 in 0 : vector<1x128xf32>, vector<1x128xf32> -> vector<2x128xf32>
    %c0_76 = arith.constant 0 : index
    %c0_77 = arith.constant 0 : index
    %c0_78 = arith.constant 0 : index
    %c0_79 = arith.constant 0 : index
    %104 = vector.load %arg5[%c0_76, %c0_77, %c0_78, %c0_79] : memref<1x1x2x128xf32, #tpu.memory_space<vmem>>, vector<1x1x2x128xf32>
    %105 = vector.shape_cast %104 : vector<1x1x2x128xf32> to vector<2x128xf32>
    %106 = vector.shape_cast %103 : vector<2x128xf32> to vector<1x1x2x128xf32>
    tpu.vector_store %arg5[%c0_76, %c0_77, %c0_78, %c0_79], %106 {strides = array<i32>} : memref<1x1x2x128xf32, #tpu.memory_space<vmem>>, vector<1x1x2x128xf32>,
    return
  }
  func.func @transform_0(%arg0: i32, %arg1: i32) -> (i32, i32, i32, i32, i32) {
    %c0_i32 = arith.constant 0 : i32
    %c0_i32_0 = arith.constant 0 : i32
    %c0_i32_1 = arith.constant 0 : i32
    %c0_i32_2 = arith.constant 0 : i32
    %c0_i32_3 = arith.constant 0 : i32
    return %arg0, %c0_i32, %c0_i32_0, %c0_i32_1, %c0_i32_2 : i32, i32, i32, i32, i32
  }
  func.func @transform_1(%arg0: i32, %arg1: i32) -> (i32, i32, i32) {
    %c0_i32 = arith.constant 0 : i32
    %c0_i32_0 = arith.constant 0 : i32
    %c0_i32_1 = arith.constant 0 : i32
    %c0_i32_2 = arith.constant 0 : i32
    return %c0_i32, %c0_i32_0, %c0_i32_1 : i32, i32, i32
  }
  func.func @transform_2(%arg0: i32, %arg1: i32) -> (i32, i32, i32, i32) {
    %c0_i32 = arith.constant 0 : i32
    %c0_i32_0 = arith.constant 0 : i32
    %c0_i32_1 = arith.constant 0 : i32
    return %arg0, %arg1, %c0_i32, %c0_i32_0 : i32, i32, i32, i32
  }
  func.func @transform_3(%arg0: i32, %arg1: i32) -> (i32, i32, i32, i32) {
    %c0_i32 = arith.constant 0 : i32
    %c0_i32_0 = arith.constant 0 : i32
    %c0_i32_1 = arith.constant 0 : i32
    return %arg0, %arg1, %c0_i32, %c0_i32_0 : i32, i32, i32, i32
  }
}

</mosaic_0001>

<bundles_post_ra>
// kernel: tpu_custom_call.1
= control target key start
LH: loop header
LB: loop body
LE: loop exit
PB: predicated region body
PF: predicated region fallthrough
CT: control target
= control target key end

     0   :  { %9 = vsyncpa [#allocation3], 0  ;;  %s5926_s0 = inlined_call_operand.vmem [shape: bf16[2,1,18,18,128], index: 0, kind: input, shape index: {}]   ;;  %s5927_s1 = inlined_call_operand.vmem [shape: bf16[9,128,128], index: 1, kind: input, shape index: {}]   ;;  %s5928_s2 = inlined_call_operand.hbm [shape: f32[2,16,16,128], index: 2, kind: output, shape index: {0}]   ;;  %s5929_s3 = inlined_call_operand.hbm [shape: f32[2,2,2,128], index: 3, kind: output, shape index: {1}]  }
   0x1   :  { %11 = vsyncpa [#allocation3 + $0x1], 0 }
   0x2   :  { %12 = vsyncpa [#allocation5], 0 }
   0x3   :  { %14 = vsyncpa [#allocation5 + $0x1], 0  ;;  %s4665_s12 = smov 0   ;;  %s4667_s13 = smov 0  }
   0x4   :  { %s4669_s14 = smov 0   ;;  %s4671_s15 = smov 0  }
   0x5   :  { %s4673_s16 = smov 0   ;;  %s4675_s17 = smov 0  }
   0x6   :  { %s4677_s18 = smov 0   ;;  %s4679_s19 = smov 0  }
   0x7 LB: > { %s3339_s20 = sadd.s32 4294967295, %s4639_s19   ;;  %s3340_s21 = sadd.s32 4294967294, %s4639_s19   ;;  %s4639_s19 = sphi %s4679_s19, %s20_s19   ;;  %s4635_s18 = sphi %s4677_s18, %s5951_s18   ;;  %s4631_s17 = sphi %s4675_s17, %s5950_s17   ;;  %s4627_s16 = sphi %s4673_s16, %s5949_s16   ;;  %s4623_s15 = sphi %s4671_s15, %s5948_s15   ;;  %s4619_s14 = sphi %s4669_s14, %s5947_s14   ;;  %s4615_s13 = sphi %s4667_s13, %s5946_s13   ;;  %s4611_s12 = sphi %s4665_s12, %s5945_s12  }
   0x8   : > { %s29_s22 = sadd.s32 1, %s4631_s17  ;;  %s32_s23 = sadd.s32 1, %s4635_s18 }
   0x9   : > { %p30_p0 = scmp.ge.s32.totalorder %s29_s22, 2  ;;  %p98_p1 = scmp.ne.s32.totalorder %s4619_s14, %s4615_s13 }
   0xa   : > { %p99_p2 = scmp.eq.s32.totalorder %s3339_s20, 3  ;;  %p104_p5 = scmp.ne.s32.totalorder %s4615_s13, %s4611_s12 }
   0xb   : > { %s5953_s22 = smov (%p30_p0, %s29_s22), 0  ;;  %s5955_s23 = smov (!%p30_p0, %s32_s23), %s4635_s18 }
   0xc   : > { %s84_s24 = ssub.s32 %s4631_s17, %s5953_s22  ;;  %p4716_p3 = por %p99_p2, %p98_p1 }
   0xd   : > { %p34_p4 = scmp.ge.s32.totalorder %s5955_s23, 2  ;;  %p105_p6 = scmp.eq.s32.totalorder %s3340_s21, 3 }
   0xe   : > { %p3343_p7 = scmp.ge.s32.totalorder %s4639_s19, 1  ;;  %p162_p9 = scmp.lt.s32.totalorder %s4639_s19, 5 }
   0xf   : > { %s5957_s23 = smov (%p34_p4, %s5955_s23), 0  ;;  %p4725_p8 = por %p105_p6, %p104_p5 }
  0x10   : > { %s83_s27 = ssub.s32 %s4635_s18, %s5957_s23  ;;  %s88_s28 = sadd.s32 1, %s4619_s14 }
  0x11   : > { %s85_s29 = sor.u32 %s84_s24, %s83_s27  ;;  %p163_p10 = pnand %p3343_p7, %p162_p9 }
  0x12   : > { %p86_p11 = scmp.eq.s32.totalorder %s85_s29, 0 }
  0x13   : > { %166 = sbr.rel (%p163_p10) target bundleno = 503 (0x1f7), region = 28 }
  0x14   : > { %s4734_s30 = scalar_select %p86_p11, %s4619_s14, %s88_s28  }
  0x1a   : > { %v4413_v0 = vld [vmem:[%s5927_s1 + $0x40] sm:$0xff]   ;;  %p191_p12 = scmp.lt.s32.totalorder %s4627_s16, 1  ;;  %v4415_v2 = vld [vmem:[%s5927_s1 + $0x48] sm:$0xff]   ;;  %v4417_v4 = vld [vmem:[%s5927_s1 + $0x50] sm:$0xff]   ;;  %s3756_s8 = smul.u32 96, %s4623_s15  ;;  %vm848_vm3 = vcmask 1042432  }
  0x1b   : > { %v4414_v1 = vld [vmem:[%s5927_s1 + $0x100] sm:$0xff]   ;;  %3902 = vmatprep.subr.bf16.mxu1 %v4413_v0  ;;  %v4416_v3 = vld [vmem:[%s5927_s1 + $0x108] sm:$0xff]   ;;  %v4418_v5 = vld [vmem:[%s5927_s1 + $0x110] sm:$0xff]   ;;  %vm242_vm0 = vsmask.f32 3328  ;;  %vm849_vm4 = vcmask 1046532  }
  0x1c   : > { %s192_s10 = scalar_select %p191_p12, %s4627_s16, 1  ;;  %4030 = vmatprep.subr.bf16.mxu0 %v4414_v1  ;;  %3903 = vmatpush3.bf16.msra.mxu1 %v4413_v0  ;;  %v4419_v6 = vld [vmem:[%s5927_s1 + $0x58] sm:$0xff]   ;;  %v4421_v8 = vld [vmem:[%s5927_s1 + $0x60] sm:$0xff]   ;;  %v4423_v10 = vld [vmem:[%s5927_s1 + $0x68] sm:$0xff]   ;;  %vm243_vm1 = vsmask.f32 7440 }
  0x1d   : > { %4031 = vmatpush3.bf16.msra.mxu0 %v4414_v1  ;;  %3904 = vmatprep.subr.bf16.mxu1 %v4415_v2  ;;  %v4420_v7 = vld [vmem:[%s5927_s1 + $0x118] sm:$0xff]   ;;  %v4422_v9 = vld [vmem:[%s5927_s1 + $0x120] sm:$0xff]   ;;  %v4424_v11 = vld [vmem:[%s5927_s1 + $0x128] sm:$0xff]   ;;  %s3757_s21 = sshll.u32 %s4623_s15, 4  ;;  %s3750_s24 = sshll.u32 %s4627_s16, 5 }
  0x1e   : > { %4032 = vmatprep.subr.bf16.mxu0 %v4416_v3  ;;  %s4334_s29 = smul.u32 216, %s192_s10  ;;  %v4425_v25 = vld [vmem:[%s5927_s1 + $0x70] sm:$0xff]   ;;  %v4427_v35 = vld [vmem:[%s5927_s1 + $0x78] sm:$0xff]   ;;  %vm4817_vm2 = vmor %vm242_vm0, %vm243_vm1  ;;  %s5775_s27 = sadd.s32 %s3757_s21, %s3750_s24 }
  0x1f   : > { %v4426_v29 = vld [vmem:[%s5927_s1 + $0x130] sm:$0xff]   ;;  %v4428_v50 = vld [vmem:[%s5927_s1 + $0x138] sm:$0xff]   ;;  %vm5114_vm5 = vmor %vm848_vm3, %vm849_vm4  ;;  %s3751_s4 = sshll.u32 %s5775_s27, 7 }
  0x20   : > { %3905 = vmatpush3.bf16.msra.mxu1 %v4415_v2  ;;  %s195_s20 = scalar_lea.vmem %s5926_s0, %s4334_s29  ;;  %v4429_v2 = vld [vmem:[%s5927_s1] sm:$0xff]   ;;  %s5810_s7 = scalar_lea.hbm %s5928_s2, %s3751_s4 }
  0x21   : > { %4033 = vmatpush3.bf16.msra.mxu0 %v4416_v3  ;;  %3906 = vmatprep.subr.bf16.mxu1 %v4417_v4  ;;  %s4772_s28 = scalar_lea.vmem %s195_s20, %s3756_s8  ;;  %v4849_v3 = vld [vmem:[%s5927_s1 + $0x140] sm:$0xff]   ;;  %s3347_s20 = sshll.u32 %s4623_s15, 3 }
  0x22   : > { %4034 = vmatprep.subr.bf16.mxu0 %v4418_v5  ;;  %v4781_v12 = vld [vmem:[%s4772_s28] sm:$0xf]  ;;  %v4784_v13 = vld [vmem:[%s4772_s28 + $0x4] sm:$0xf]  ;;  %v4787_v14 = vld [vmem:[%s4772_s28 + $0x8] sm:$0x1] }
  0x23   : > { %v246_v15 = vshrl.u32 %v4781_v12, 16  ;;  %v249_v16 = vshll.u32 %v4781_v12, 16  ;;  %v255_v17 = vshll.u32 %v4784_v13, 16  ;;  %v259_v18 = vshrl.u32 %v4784_v13, 16  ;;  %v3488_v20 = vld [vmem:[%s4772_s28 + $0xc] sm:$0xf] }
  0x24   : > { %3907 = vmatpush3.bf16.msra.mxu1 %v4417_v4  ;;  %v265_v19 = vshll.u32 %v4787_v14, 16  ;;  %v4796_v23 = vld [vmem:[%s4772_s28 + $0x10] sm:$0xf]  ;;  %v4799_v24 = vld [vmem:[%s4772_s28 + $0x14] sm:$0x1]  ;;  %v1388_v28 = vshrl.u32 %v3488_v20, 16 }
  0x25   : > { %4035 = vmatpush3.bf16.msra.mxu0 %v4418_v5  ;;  %3908 = vmatprep.subr.bf16.mxu1 %v4419_v6  ;;  %v248_v21 = vrot.slane %v246_v15, 4  ;;  %v251_v22 = vrot.slane %v249_v16, 5  ;;  %v257_v26 = vrot.slane %v255_v17, 5  ;;  %v261_v27 = vrot.slane %v259_v18, 4  ;;  %v4810_v34 = vld [vmem:[%s4772_s28 + $0xc] sm:$0xf] }
  0x26   : > { %4036 = vmatprep.subr.bf16.mxu0 %v4420_v7  ;;  %v1391_v31 = vshll.u32 %v3488_v20, 16  ;;  %v1397_v32 = vshll.u32 %v4796_v23, 16  ;;  %v1401_v33 = vshrl.u32 %v4796_v23, 16  ;;  %v267_v38 = vrot.slane %v265_v19, 5  ;;  %v4823_v41 = vld [vmem:[%s4772_s28 + $0x10] sm:$0xf] }
  0x27   : > { %v252_v30 = vor.u32 %v251_v22, %v248_v21  ;;  %v262_v37 = vor.u32 %v261_v27, %v257_v26  ;;  %v1390_v39 = vrot.slane %v1388_v28, 4  ;;  %v1407_v40 = vshll.u32 %v4799_v24, 16  ;;  %v4833_v54 = vld [vmem:[%s4772_s28 + $0x14] sm:$0x1]  ;;  %v3491_v56 = vld [vmem:[%s4772_s28 + $0x18] sm:$0xf] }
  0x28   : > { %3909 = vmatpush3.bf16.msra.mxu1 %v4419_v6  ;;  %v1393_v43 = vrot.slane %v1391_v31, 5  ;;  %v1399_v44 = vrot.slane %v1397_v32, 5  ;;  %v1403_v45 = vrot.slane %v1401_v33, 4  ;;  %v270_v48 = vshrl.u32 %v4810_v34, 16  ;;  %v4841_v61 = vld [vmem:[%s4772_s28 + $0x1c] sm:$0xf] }
  0x29   : > { %4037 = vmatpush3.bf16.msra.mxu0 %v4420_v7  ;;  %3910 = vmatprep.subr.bf16.mxu1 %v4421_v8  ;;  %v253_v42 = vrot.slane %v252_v30, 4  ;;  %v263_v46 = vrot.slane %v262_v37, 4  ;;  %v1409_v47 = vrot.slane %v1407_v40, 5  ;;  %v273_v49 = vshll.u32 %v4810_v34, 16  ;;  %v4853_v7 = vld [vmem:[%s4772_s28 + $0x20] sm:$0x1] }
  0x2a   : > { %4038 = vmatprep.subr.bf16.mxu0 %v4422_v9  ;;  %v1394_v52 = vor.u32 %v1393_v43, %v1390_v39  ;;  %v1404_v53 = vor.u32 %v1403_v45, %v1399_v44  ;;  %v279_v55 = vshll.u32 %v4823_v41, 16  ;;  %v272_v58 = vrot.slane %v270_v48, 4  ;;  %v4870_v33 = vld [vmem:[%s4772_s28 + $0x1c] sm:$0xf] }
  0x2b   : > { %v258_v51 = vsel %vm4817_vm2, %v253_v42, %v257_v26  ;;  %v268_v57 = vsel %vm4817_vm2, %v263_v46, %v267_v38  ;;  %v275_v59 = vrot.slane %v273_v49, 5  ;;  %v283_v60 = vshrl.u32 %v4823_v41, 16  ;;  %v3494_v42 = vld [vmem:[%s4772_s28 + $0x24] sm:$0xf]  ;;  %v4431_v46 = vld [vmem:[%s5927_s1 + $0x8] sm:$0xff]  }
  0x2c   : > { %3911 = vmatpush3.bf16.msra.mxu1 %v4421_v8  ;;  %v3366_v62 = vcombine.low %v258_v51, %v268_v57  ;;  %v1395_v63 = vrot.slane %v1394_v52, 4  ;;  %v1405_v0 = vrot.slane %v1404_v53, 4  ;;  %v281_v1 = vrot.slane %v279_v55, 5  ;;  %v4885_v52 = vld [vmem:[%s4772_s28 + $0x28] sm:$0xf] }
  0x2d   : > { %4039 = vmatpush3.bf16.msra.mxu0 %v4422_v9  ;;  %3912 = vmatprep.subr.bf16.mxu1 %v4423_v10  ;;  %v276_v4 = vor.u32 %v275_v59, %v272_v58  ;;  %v285_v5 = vrot.slane %v283_v60, 4  ;;  %v289_v6 = vshll.u32 %v4833_v54, 16  ;;  %v1421_v21 = vshll.u32 %v4841_v61, 16  ;;  %v4890_v57 = vld [vmem:[%s4772_s28 + $0x2c] sm:$0x1]  ;;  %v4433_v59 = vld [vmem:[%s5927_s1 + $0x10] sm:$0xff]  }
  0x2e   : > { %4040 = vmatprep.subr.bf16.mxu0 %v4424_v11  ;;  %3918 = vmatprep.mubr.bf16.mxu1 %v3366_v62  ;;  %v1400_v8 = vsel %vm4817_vm2, %v1395_v63, %v1399_v44  ;;  %v1410_v9 = vsel %vm4817_vm2, %v1405_v0, %v1409_v47  ;;  %v1425_v22 = vshrl.u32 %v4841_v61, 16  ;;  %v303_v49 = vshll.u32 %v4870_v33, 16  ;;  %v4432_v60 = vld [vmem:[%s5927_s1 + $0x148] sm:$0xff]  }
  0x2f   : > { %v3528_v15 = vcombine.low %v1400_v8, %v1410_v9  ;;  %v277_v16 = vrot.slane %v276_v4, 4  ;;  %v286_v17 = vor.u32 %v285_v5, %v281_v1  ;;  %v291_v18 = vrot.slane %v289_v6, 5  ;;  %v4899_v4 = vld [vmem:[%s4772_s28 + $0x24] sm:$0xf] }
  0x30   : > { %3913 = vmatpush3.bf16.msra.mxu1 %v4423_v10  ;;  %v1412_v10 = vshrl.u32 %v3491_v56, 16  ;;  %v1423_v31 = vrot.slane %v1421_v21, 5  ;;  %v1427_v32 = vrot.slane %v1425_v22, 4  ;;  %v1436_v58 = vshrl.u32 %v3494_v42, 16  ;;  %v3497_v22 = vld [vmem:[%s4772_s28 + $0x30] sm:$0xf] }
  0x31   : > { %4041 = vmatpush3.bf16.msra.mxu0 %v4424_v11  ;;  %3914 = vmatprep.subr.bf16.mxu1 %v4425_v25  ;;  %v1415_v11 = vshll.u32 %v3491_v56, 16  ;;  %v282_v27 = vsel %vm4817_vm2, %v277_v16, %v281_v1  ;;  %v287_v28 = vrot.slane %v286_v17, 4  ;;  %v305_v62 = vrot.slane %v303_v49, 5  ;;  %v4906_v16 = vld [vmem:[%s4772_s28 + $0x28] sm:$0xf] }
  0x32   : > { %4042 = vmatprep.subr.bf16.mxu0 %v4426_v29  ;;  %v1414_v19 = vrot.slane %v1412_v10, 4  ;;  %4046 = vmatprep.mubr.bf16.mxu0 %v3528_v15  ;;  %v1428_v45 = vor.u32 %v1427_v32, %v1423_v31  ;;  %v1439_v1 = vshll.u32 %v3494_v42, 16  ;;  %v1438_v8 = vrot.slane %v1436_v58, 4  ;;  %v4909_v17 = vld [vmem:[%s4772_s28 + $0x2c] sm:$0x1]  ;;  %v4434_v32 = vld [vmem:[%s5927_s1 + $0x150] sm:$0xff]  }
  0x33   : > { %v1417_v20 = vrot.slane %v1415_v11, 5  ;;  %v292_v37 = vsel %vm4817_vm2, %v287_v28, %v291_v18  ;;  %v1449_v15 = vshrl.u32 %v4885_v52, 16  ;;  %v318_v21 = vshrl.u32 %v4899_v4, 16  ;;  %v4435_v42 = vld [vmem:[%s5927_s1 + $0x18] sm:$0xff]  }
  0x34   : > { %3915 = vmatpush3.bf16.msra.mxu1 %v4425_v25  ;;  %v4862_v25 = vld [vmem:[%s4772_s28 + $0x18] sm:$0xf]  ;;  %v3367_v43 = vcombine.low %v282_v27, %v292_v37  ;;  %v1429_v55 = vrot.slane %v1428_v45, 4  ;;  %v1441_v11 = vrot.slane %v1439_v1, 5  ;;  %v337_v49 = vshll.u32 %v4909_v17, 16 }
  0x35   : > { %4043 = vmatpush3.bf16.msra.mxu0 %v4426_v29  ;;  %3916 = vmatprep.subr.bf16.mxu1 %v4427_v35  ;;  %v1431_v29 = vshll.u32 %v4853_v7, 16  ;;  %v1418_v30 = vor.u32 %v1417_v20, %v1414_v19  ;;  %v294_v40 = vshrl.u32 %v4862_v25, 16  ;;  %v297_v47 = vshll.u32 %v4862_v25, 16  ;;  %v4436_v58 = vld [vmem:[%s5927_s1 + $0x158] sm:$0xff]  }
  0x36   : > { %4044 = vmatprep.subr.bf16.mxu0 %v4428_v50  ;;  %v1455_v20 = vshll.u32 %v4890_v57, 16  ;;  %v1442_v28 = vor.u32 %v1441_v11, %v1438_v8 }
  0x37   : > { %v1433_v38 = vrot.slane %v1431_v29, 5  ;;  %v1419_v44 = vrot.slane %v1418_v30, 4  ;;  %v296_v48 = vrot.slane %v294_v40, 4  ;;  %v299_v56 = vrot.slane %v297_v47, 5 }
  0x38   : > { %3917 = vmatpush3.bf16.msra.mxu1 %v4427_v35  ;;  %v236_v35 = vld [vmem:[%s4772_s28 + $0x20] sm:$0x1]  ;;  %v1451_v29 = vrot.slane %v1449_v15, 4  ;;  %v321_v30 = vshll.u32 %v4899_v4, 16  ;;  %v1457_v37 = vrot.slane %v1455_v20, 5  ;;  %v327_v40 = vshll.u32 %v4906_v16, 16 }
  0x39   : > { %4045 = vmatpush3.bf16.msra.mxu0 %v4428_v50  ;;  %3934 = vmatprep.subr.bf16.mxu1 %v4429_v2  ;;  %v307_v50 = vshrl.u32 %v4870_v33, 16  ;;  %v313_v51 = vshll.u32 %v236_v35, 16  ;;  %v1424_v53 = vsel %vm4817_vm2, %v1419_v44, %v1423_v31  ;;  %v1434_v5 = vsel %vm4817_vm2, %v1429_v55, %v1433_v38  ;;  %v4916_v31 = vld [vmem:[%s4772_s28 + $0x34] sm:$0xf]  ;;  %v4935_v55 = vld [vmem:[%s4772_s28 + $0x38] sm:$0x1] }
  0x3a   : > { %4062 = vmatprep.subr.bf16.mxu0 %v4849_v3  ;;  %v300_v6 = vor.u32 %v299_v56, %v296_v48  ;;  %v3529_v9 = vcombine.low %v1424_v53, %v1434_v5  ;;  %v320_v38 = vrot.slane %v318_v21, 4  ;;  %v1443_v44 = vrot.slane %v1442_v28, 4  ;;  %v4942_v5 = vld [vmem:[%s4772_s28 + $0x30] sm:$0xf] }
  0x3b   : > { %3919 = vmatmul.mubr.bf16.vlgmr.msra.gmra.mrb[0].mxu1 %v3367_v43  ;;  %v309_v63 = vrot.slane %v307_v50, 4  ;;  %v315_v0 = vrot.slane %v313_v51, 5  ;;  %v329_v47 = vrot.slane %v327_v40, 5  ;;  %v331_v48 = vshrl.u32 %v4906_v16, 16 }
  0x3c   : > { %3935 = vmatpush3.bf16.msra.mxu1 %v4429_v2  ;;  %v1445_v2 = vshll.u32 %v4885_v52, 16  ;;  %v301_v18 = vrot.slane %v300_v6, 4  ;;  %4047 = vmatmul.mubr.bf16.vlgmr.msra.gmra.mrb[0].mxu0 %v3529_v9  ;;  %v1460_v56 = vshrl.u32 %v3497_v22, 16  ;;  %v1469_v1 = vshll.u32 %v4916_v31, 16  ;;  %v4948_v9 = vld [vmem:[%s4772_s28 + $0x34] sm:$0xf] }
  0x3d   : > { %3936 = vmatprep.subr.bf16.mxu1 %v4431_v46  ;;  %v310_v10 = vor.u32 %v309_v63, %v305_v62  ;;  %4063 = vmatpush3.bf16.msra.mxu0 %v4849_v3  ;;  %v323_v3 = vrot.slane %v321_v30, 5  ;;  %v339_v63 = vrot.slane %v337_v49, 5  ;;  %v1479_v21 = vshll.u32 %v4935_v55, 16 }
  0x3e   : > { %v1447_v19 = vrot.slane %v1445_v2, 5  ;;  %v306_v35 = vsel %vm4817_vm2, %v301_v18, %v305_v62  ;;  %4064 = vmatprep.subr.bf16.mxu0 %v4432_v60  ;;  %v333_v62 = vrot.slane %v331_v48, 4  ;;  %v1462_v2 = vrot.slane %v1460_v56, 4  ;;  %v4973_v48 = vld [vmem:[%s4772_s28 + $0x40] sm:$0xf]  ;;  %v4441_v56 = vld [vmem:[%s5927_s1 + $0x30] sm:$0xff]  }
  0x3f   : > { %v311_v27 = vrot.slane %v310_v10, 4  ;;  %v324_v53 = vor.u32 %v323_v3, %v320_v38  ;;  %v1471_v18 = vrot.slane %v1469_v1, 5  ;;  %v345_v30 = vshll.u32 %v4942_v5, 16 }
  0x40   : > { %3937 = vmatpush3.bf16.msra.mxu1 %v4431_v46  ;;  %v1452_v45 = vor.u32 %v1451_v29, %v1447_v19  ;;  %v1448_v50 = vsel %vm4817_vm2, %v1443_v44, %v1447_v19  ;;  %v334_v11 = vor.u32 %v333_v62, %v329_v47  ;;  %v4958_v29 = vld [vmem:[%s4772_s28 + $0x38] sm:$0x1]  ;;  %v1481_v40 = vrot.slane %v1479_v21, 5  ;;  %v3500_v44 = vld [vmem:[%s4772_s28 + $0x3c] sm:$0xf] }
  0x41   : > { %3938 = vmatprep.subr.bf16.mxu1 %v4433_v59  ;;  %v316_v43 = vsel %vm4817_vm2, %v311_v27, %v315_v0  ;;  %4065 = vmatpush3.bf16.msra.mxu0 %v4432_v60  ;;  %v1463_v0 = vshll.u32 %v3497_v22, 16  ;;  %v325_v8 = vrot.slane %v324_v53, 4  ;;  %v4437_v60 = vld [vmem:[%s5927_s1 + $0x20] sm:$0xff]   ;;  %v342_v22 = vshrl.u32 %v4942_v5, 16 }
  0x42   : > { %v3368_v46 = vcombine.low %v306_v35, %v316_v43  ;;  %v1453_v51 = vrot.slane %v1452_v45, 4  ;;  %4066 = vmatprep.subr.bf16.mxu0 %v4434_v32  ;;  %v335_v27 = vrot.slane %v334_v11, 4  ;;  %v351_v35 = vshll.u32 %v4948_v9, 16  ;;  %v4994_v11 = vld [vmem:[%s4772_s28 + $0x40] sm:$0xf] }
  0x43   : > { %v1465_v15 = vrot.slane %v1463_v0, 5  ;;  %v330_v19 = vsel %vm4817_vm2, %v325_v8, %v329_v47  ;;  %v355_v43 = vshrl.u32 %v4948_v9, 16  ;;  %v361_v53 = vshll.u32 %v4958_v29, 16  ;;  %v4982_v0 = vld [vmem:[%s4772_s28 + $0x44] sm:$0x1]  ;;  %v4440_v8 = vld [vmem:[%s5927_s1 + $0x168] sm:$0xff]  }
  0x44   : > { %3939 = vmatpush3.bf16.msra.mxu1 %v4433_v59  ;;  %3922 = vmatprep.mubr.bf16.mxu1 %v3368_v46  ;;  %v1458_v6 = vsel %vm4817_vm2, %v1453_v51, %v1457_v37  ;;  %v1473_v59 = vshrl.u32 %v4916_v31, 16  ;;  %v4439_v37 = vld [vmem:[%s5927_s1 + $0x28] sm:$0xff]   ;;  %v340_v45 = vsel %vm4817_vm2, %v335_v27, %v339_v63  ;;  %v347_v46 = vrot.slane %v345_v30, 5  ;;  %v4997_v21 = vld [vmem:[%s4772_s28 + $0x44] sm:$0x1] }
  0x45   : > { %3940 = vmatprep.subr.bf16.mxu1 %v4435_v42  ;;  %v3530_v10 = vcombine.low %v1448_v50, %v1458_v6  ;;  %v1466_v28 = vor.u32 %v1465_v15, %v1462_v2  ;;  %4067 = vmatpush3.bf16.msra.mxu0 %v4434_v32  ;;  %v4438_v32 = vld [vmem:[%s5927_s1 + $0x160] sm:$0xff]   ;;  %v353_v47 = vrot.slane %v351_v35, 5  ;;  %v3369_v49 = vcombine.low %v330_v19, %v340_v45  ;;  %v5010_v45 = vld [vmem:[%s4772_s28 + $0x4c] sm:$0xf] }
  0x46   : > { %v1475_v20 = vrot.slane %v1473_v59, 4  ;;  %4068 = vmatprep.subr.bf16.mxu0 %v4436_v58  ;;  %v357_v51 = vrot.slane %v355_v43, 4  ;;  %v1484_v1 = vshrl.u32 %v3500_v44, 16  ;;  %v1487_v6 = vshll.u32 %v3500_v44, 16  ;;  %5936 = vst [vmem:[#allocation8_spill] sm:$0xff] %v4997_v21 }
  0x47   : > { %4050 = vmatprep.mubr.bf16.mxu0 %v3530_v10  ;;  %v1467_v3 = vrot.slane %v1466_v28, 4  ;;  %3923 = vmatmul.mubr.bf16.gmra.mrb[4].mxu1 %v3369_v49  ;;  %v4991_v10 = vld [vmem:[%s4772_s28 + $0x3c] sm:$0xf]  ;;  %v1497_v30 = vshrl.u32 %v4973_v48, 16  ;;  %v1503_v35 = vshll.u32 %v4982_v0, 16 }
  0x48   : > { %3941 = vmatpush3.bf16.msra.mxu1 %v4435_v42  ;;  %v1476_v38 = vor.u32 %v1475_v20, %v1471_v18  ;;  %v344_v42 = vrot.slane %v342_v22, 4  ;;  %v358_v59 = vor.u32 %v357_v51, %v353_v47  ;;  %v1486_v19 = vrot.slane %v1484_v1, 4  ;;  %v4443_v22 = vld [vmem:[%s5927_s1 + $0x38] sm:$0xff]  }
  0x49   : > { %3942 = vmatprep.subr.bf16.mxu1 %v4437_v60  ;;  %v1472_v62 = vsel %vm4817_vm2, %v1467_v3, %v1471_v18  ;;  %4069 = vmatpush3.bf16.msra.mxu0 %v4436_v58  ;;  %v1493_v58 = vshll.u32 %v4973_v48, 16  ;;  %v1489_v20 = vrot.slane %v1487_v6, 5  ;;  %v366_v43 = vshrl.u32 %v4991_v10, 16 }
  0x4a   : > { %v1477_v50 = vrot.slane %v1476_v38, 4  ;;  %v348_v63 = vor.u32 %v347_v46, %v344_v42  ;;  %4070 = vmatprep.subr.bf16.mxu0 %v4438_v32  ;;  %v359_v27 = vrot.slane %v358_v59, 4  ;;  %v3503_v38 = vld [vmem:[%s4772_s28 + $0x48] sm:$0xf]  ;;  %v369_v44 = vshll.u32 %v4991_v10, 16 }
  0x4b   : > { %v1495_v28 = vrot.slane %v1493_v58, 5  ;;  %v1490_v42 = vor.u32 %v1489_v20, %v1486_v19  ;;  %v1499_v46 = vrot.slane %v1497_v30, 4  ;;  %v1505_v49 = vrot.slane %v1503_v35, 5 }
  0x4c   : > { %3943 = vmatpush3.bf16.msra.mxu1 %v4437_v60  ;;  %v1482_v2 = vsel %vm4817_vm2, %v1477_v50, %v1481_v40  ;;  %v363_v60 = vrot.slane %v361_v53, 5  ;;  %v349_v18 = vrot.slane %v348_v63, 4  ;;  %v375_v50 = vshll.u32 %v4994_v11, 16 }
  0x4d   : > { %3944 = vmatprep.subr.bf16.mxu1 %v4439_v37  ;;  %v3531_v15 = vcombine.low %v1472_v62, %v1482_v2  ;;  %4071 = vmatpush3.bf16.msra.mxu0 %v4438_v32  ;;  %v1491_v51 = vrot.slane %v1490_v42, 4  ;;  %v371_v53 = vrot.slane %v369_v44, 5  ;;  %v4442_v62 = vld [vmem:[%s5927_s1 + $0x170] sm:$0xff]   ;;  %v1500_v63 = vor.u32 %v1499_v46, %v1495_v28  ;;  %v5036_v42 = vld [vmem:[%s4772_s28 + $0x48] sm:$0xf] }
  0x4e   : > { %v354_v40 = vsel %vm4817_vm2, %v349_v18, %v353_v47  ;;  %v364_v3 = vsel %vm4817_vm2, %v359_v27, %v363_v60  ;;  %v368_v47 = vrot.slane %v366_v43, 4  ;;  %4072 = vmatprep.subr.bf16.mxu0 %v4440_v8  ;;  %v377_v1 = vrot.slane %v375_v50, 5  ;;  %v5023_v60 = vld [vmem:[%s4772_s28 + $0x50] sm:$0x1]  ;;  %v5028_v18 = vld [vmem:[%s5927_s1 + $0x80] sm:$0xff]  }
  0x4f   : > { %4051 = vmatmul.mubr.bf16.gmra.mrb[4].mxu0 %v3531_v15  ;;  %v379_v6 = vshrl.u32 %v4994_v11, 16  ;;  %v385_v2 = vshll.u32 %v4997_v21, 16  ;;  %v1496_v32 = vsel %vm4817_vm2, %v1491_v51, %v1495_v28  ;;  %v1508_v58 = vshrl.u32 %v3503_v38, 16  ;;  %v4444_v28 = vld [vmem:[%s5927_s1 + $0x178] sm:$0xff]   ;;  %v5042_v46 = vld [vmem:[%s4772_s28 + $0x4c] sm:$0xf] }
  0x50   : > { %3945 = vmatpush3.bf16.msra.mxu1 %v4439_v37  ;;  %v3370_v37 = vcombine.low %v354_v40, %v364_v3  ;;  %v372_v59 = vor.u32 %v371_v53, %v368_v47  ;;  %v1511_v15 = vshll.u32 %v3503_v38, 16  ;;  %v1501_v19 = vrot.slane %v1500_v63, 4  ;;  %v5047_v53 = vld [vmem:[%s4772_s28 + $0x50] sm:$0x1]  ;;  %v3506_v63 = vld [vmem:[%s4772_s28 + $0x54] sm:$0xf] }
  0x51   : > { %3946 = vmatprep.subr.bf16.mxu1 %v4441_v56  ;;  %v381_v20 = vrot.slane %v379_v6, 4  ;;  %v1517_v27 = vshll.u32 %v5010_v45, 16  ;;  %4073 = vmatpush3.bf16.msra.mxu0 %v4440_v8  ;;  %v1510_v35 = vrot.slane %v1508_v58, 4  ;;  %v1521_v40 = vshrl.u32 %v5010_v45, 16  ;;  %5937 = vst [vmem:[#allocation9_spill] sm:$0xff] %v5047_v53 }
  0x52   : > { %3926 = vmatprep.mubr.bf16.mxu1 %v3370_v37  ;;  %v373_v30 = vrot.slane %v372_v59, 4  ;;  %v1513_v38 = vrot.slane %v1511_v15, 5  ;;  %4074 = vmatprep.subr.bf16.mxu0 %v4442_v62  ;;  %v1506_v43 = vsel %vm4817_vm2, %v1501_v19, %v1505_v49  ;;  %v1527_v8 = vshll.u32 %v5023_v60, 16  ;;  %v5058_v15 = vld [vmem:[%s5927_s1 + $0x180] sm:$0xff]  }
  0x53   : > { %v382_v44 = vor.u32 %v381_v20, %v377_v1  ;;  %v1519_v3 = vrot.slane %v1517_v27, 5  ;;  %v3532_v50 = vcombine.low %v1496_v32, %v1506_v43  ;;  %v1523_v47 = vrot.slane %v1521_v40, 4 }
  0x54   : > { %3947 = vmatpush3.bf16.msra.mxu1 %v4441_v56  ;;  %v387_v56 = vrot.slane %v385_v2, 5  ;;  %v378_v37 = vsel %vm4817_vm2, %v373_v30, %v377_v1  ;;  %v1514_v51 = vor.u32 %v1513_v38, %v1510_v35  ;;  %v1529_v49 = vrot.slane %v1527_v8, 5  ;;  %v5064_v30 = vld [vmem:[%s4772_s28 + $0x58] sm:$0xf]  ;;  %v5072_v8 = vld [vmem:[%s4772_s28 + $0x54] sm:$0xf] }
  0x55   : > { %3948 = vmatprep.subr.bf16.mxu1 %v4443_v22  ;;  %v383_v6 = vrot.slane %v382_v44, 4  ;;  %v390_v2 = vshrl.u32 %v5036_v42, 16  ;;  %v393_v59 = vshll.u32 %v5036_v42, 16  ;;  %4075 = vmatpush3.bf16.msra.mxu0 %v4442_v62  ;;  %v1524_v1 = vor.u32 %v1523_v47, %v1519_v3  ;;  %v5069_v44 = vld [vmem:[%s4772_s28 + $0x5c] sm:$0x1] }
  0x56   : > { %4054 = vmatprep.mubr.bf16.mxu0 %v3532_v50  ;;  %v399_v32 = vshll.u32 %v5042_v46, 16  ;;  %v403_v58 = vshrl.u32 %v5042_v46, 16  ;;  %4076 = vmatprep.subr.bf16.mxu0 %v4444_v28  ;;  %v409_v27 = vshll.u32 %v5047_v53, 16  ;;  %v5099_v53 = vld [vmem:[%s4772_s28 + $0x68] sm:$0x1] }
  0x57   : > { %v388_v19 = vsel %vm4817_vm2, %v383_v6, %v387_v56  ;;  %v392_v62 = vrot.slane %v390_v2, 4  ;;  %v395_v20 = vrot.slane %v393_v59, 5  ;;  %v1525_v40 = vrot.slane %v1524_v1, 4  ;;  %v5075_v6 = vld [vmem:[%s4772_s28 + $0x58] sm:$0xf] }
  0x58   : > { %3949 = vmatpush3.bf16.msra.mxu1 %v4443_v22  ;;  %v1515_v22 = vrot.slane %v1514_v51, 4  ;;  %v3371_v35 = vcombine.low %v378_v37, %v388_v19  ;;  %v401_v43 = vrot.slane %v399_v32, 5  ;;  %v405_v51 = vrot.slane %v403_v58, 4 }
  0x59   : > { %3966 = vmatprep.subr.bf16.mxu1 %v5028_v18  ;;  %v396_v50 = vor.u32 %v395_v20, %v392_v62  ;;  %v411_v47 = vrot.slane %v409_v27, 5  ;;  %v1532_v56 = vshrl.u32 %v3506_v63, 16  ;;  %4077 = vmatpush3.bf16.msra.mxu0 %v4444_v28  ;;  %v1530_v37 = vsel %vm4817_vm2, %v1525_v40, %v1529_v49  ;;  %v5084_v20 = vld [vmem:[%s4772_s28 + $0x5c] sm:$0x1] }
  0x5a   : > { %v1520_v38 = vsel %vm4817_vm2, %v1515_v22, %v1519_v3  ;;  %3927 = vmatmul.mubr.bf16.gmra.mrb[8].mxu1 %v3371_v35  ;;  %v1535_v3 = vshll.u32 %v3506_v63, 16  ;;  %v1541_v2 = vshll.u32 %v5064_v30, 16  ;;  %v1545_v59 = vshrl.u32 %v5064_v30, 16  ;;  %4094 = vmatprep.subr.bf16.mxu0 %v5058_v15  ;;  %v3509_v63 = vld [vmem:[%s4772_s28 + $0x60] sm:$0xf] }
  0x5b   : > { %v3533_v22 = vcombine.low %v1520_v38, %v1530_v37  ;;  %v397_v1 = vrot.slane %v396_v50, 4  ;;  %v406_v32 = vor.u32 %v405_v51, %v401_v43  ;;  %v1534_v58 = vrot.slane %v1532_v56, 4 }
  0x5c   : > { %v1537_v28 = vrot.slane %v1535_v3, 5  ;;  %v1543_v19 = vrot.slane %v1541_v2, 5  ;;  %v1547_v62 = vrot.slane %v1545_v59, 4  ;;  %v1551_v49 = vshll.u32 %v5069_v44, 16  ;;  %v5093_v3 = vld [vmem:[%s4772_s28 + $0x64] sm:$0xf] }
  0x5d   : > { %4055 = vmatmul.mubr.bf16.gmra.mrb[8].mxu0 %v3533_v22  ;;  %v402_v27 = vsel %vm4817_vm2, %v397_v1, %v401_v43  ;;  %v407_v35 = vrot.slane %v406_v32, 4  ;;  %v414_v38 = vshrl.u32 %v5072_v8, 16  ;;  %v417_v40 = vshll.u32 %v5072_v8, 16 }
  0x5e   : > { %v1538_v50 = vor.u32 %v1537_v28, %v1534_v58  ;;  %v1548_v51 = vor.u32 %v1547_v62, %v1543_v19  ;;  %v1553_v56 = vrot.slane %v1551_v49, 5  ;;  %v423_v37 = vshll.u32 %v5075_v6, 16  ;;  %v3544_v58 = vld [vmem:[%s4772_s28 + $0xc] sm:$0xe] }
  0x5f   : > { %v412_v2 = vsel %vm4817_vm2, %v407_v35, %v411_v47  ;;  %v416_v59 = vrot.slane %v414_v38, 4  ;;  %v419_v22 = vrot.slane %v417_v40, 5  ;;  %v427_v43 = vshrl.u32 %v5075_v6, 16 }
  0x60   : > { %v3372_v1 = vcombine.low %v402_v27, %v412_v2  ;;  %v1539_v32 = vrot.slane %v1538_v50, 4  ;;  %v1549_v26 = vrot.slane %v1548_v51, 4  ;;  %v425_v39 = vrot.slane %v423_v37, 5 }
  0x61   : > { %v420_v28 = vor.u32 %v419_v22, %v416_v59  ;;  %v429_v62 = vrot.slane %v427_v43, 4  ;;  %v433_v49 = vshll.u32 %v5084_v20, 16  ;;  %v1556_v21 = vshrl.u32 %v3509_v63, 16 }
  0x62   : > { %3930 = vmatprep.mubr.bf16.mxu1 %v3372_v1  ;;  %v1544_v47 = vsel %vm4817_vm2, %v1539_v32, %v1543_v19  ;;  %v1554_v35 = vsel %vm4817_vm2, %v1549_v26, %v1553_v56  ;;  %v1559_v38 = vshll.u32 %v3509_v63, 16  ;;  %v1565_v27 = vshll.u32 %v5093_v3, 16 }
  0x63   : > { %v3534_v40 = vcombine.low %v1544_v47, %v1554_v35  ;;  %v421_v50 = vrot.slane %v420_v28, 4  ;;  %v430_v51 = vor.u32 %v429_v62, %v425_v39  ;;  %v435_v37 = vrot.slane %v433_v49, 5  ;;  %v3545_v49 = vld [vmem:[%s4772_s28 + $0x18] sm:$0xe]  ;;  %v3546_v47 = vld [vmem:[%s4772_s28 + $0x24] sm:$0xe] }
  0x64   : > { %v1558_v2 = vrot.slane %v1556_v21, 4  ;;  %v1561_v59 = vrot.slane %v1559_v38, 5  ;;  %v1567_v22 = vrot.slane %v1565_v27, 5  ;;  %v1569_v43 = vshrl.u32 %v5093_v3, 16 }
  0x65   : > { %4058 = vmatprep.mubr.bf16.mxu0 %v3534_v40  ;;  %v426_v19 = vsel %vm4817_vm2, %v421_v50, %v425_v39  ;;  %v431_v1 = vrot.slane %v430_v51, 4  ;;  %v1575_v26 = vshll.u32 %v5099_v53, 16  ;;  %v3552_v63 = vrot.slane %v3544_v58, 9 }
  0x66   : > { %v1562_v56 = vor.u32 %v1561_v59, %v1558_v2  ;;  %v1571_v32 = vrot.slane %v1569_v43, 4  ;;  %v1823_v21 = vrot.slane %v4796_v23, 5  ;;  %v3382_v39 = vcombine.low %v4781_v12, %v4784_v13 }
  0x67   : > { %v436_v62 = vsel %vm4817_vm2, %v431_v1, %v435_v37  ;;  %v1577_v27 = vrot.slane %v1575_v26, 5  ;;  %v1837_v37 = vrot.slane %v4885_v52, 5  ;;  %v5940_v12 = vrot.slane %v4841_v61, 5  ;;  %v5164_v61 = vld [vmem:[%s4772_s28 + $0x48] sm:$0xe] }
  0x68   : > { %v3373_v35 = vcombine.low %v426_v19, %v436_v62  ;;  %v1563_v58 = vrot.slane %v1562_v56, 4  ;;  %v1572_v38 = vor.u32 %v1571_v32, %v1567_v22  ;;  %v1824_v40 = vsel %vm5114_vm5, %v3552_v63, %v1823_v21  ;;  %v3547_v63 = vld [vmem:[%s4772_s28 + $0x30] sm:$0xe] }
  0x69   : > { %v1825_v50 = vrot.slane %v1823_v21, 4  ;;  %v1832_v13 = vrot.slane %v5940_v12, 4  ;;  %v1833_v2 = vrot.slane %v4853_v7, 5  ;;  %v5941_v59 = vrot.slane %v4799_v24, 5 }
  0x6a   : > { %3931 = vmatmul.mubr.bf16.gmra.mrb[12].mxu1 %v3373_v35  ;;  %v1568_v23 = vsel %vm4817_vm2, %v1563_v58, %v1567_v22  ;;  %v1573_v51 = vrot.slane %v1572_v38, 4  ;;  %v3553_v22 = vrot.slane %v3545_v49, 9  ;;  %v3554_v26 = vrot.slane %v3546_v47, 9  ;;  %v3548_v49 = vld [vmem:[%s4772_s28 + $0x3c] sm:$0xe]  ;;  %v4449_v35 = vld [vmem:[%s5927_s1 + $0x88] sm:$0xff]  }
  0x6b   : > { %3950 = vmatprep.mubr.bf16.mxu1 %v3382_v39  ;;  %v1827_v43 = vsel %vm5114_vm5, %v1825_v50, %v5941_v59  ;;  %v1839_v56 = vrot.slane %v1837_v37, 4  ;;  %v1840_v32 = vrot.slane %v4890_v57, 5  ;;  %v856_v7 = vrot.slane %v4787_v14, 5 }
  0x6c   : > { %v1578_v19 = vsel %vm4817_vm2, %v1573_v51, %v1577_v27  ;;  %v3576_v1 = vcombine.low %v1824_v40, %v1827_v43  ;;  %v863_v24 = vrot.slane %v4833_v54, 5  ;;  %v3383_v21 = vcombine.low %v4810_v34, %v4823_v41  ;;  %v4455_v43 = vld [vmem:[%s5927_s1 + $0x98] sm:$0xff]  }
  0x6d   : > { %v3535_v52 = vcombine.low %v1568_v23, %v1578_v19  ;;  %v1834_v62 = vsel %vm5114_vm5, %v1832_v13, %v1833_v2  ;;  %v3384_v39 = vcombine.low %v4862_v25, %v4870_v33  ;;  %v5942_v47 = vmov %v5940_v12  ;;  %v5174_v23 = vld [vmem:[%s4772_s28 + $0x54] sm:$0xe] }
  0x6e   : > { %v1831_v57 = vsel %vm5114_vm5, %v3553_v22, %v5942_v47  ;;  %v3555_v34 = vrot.slane %v3547_v63, 9  ;;  %v1844_v41 = vrot.slane %v4916_v31, 5  ;;  %v1851_v58 = vrot.slane %v4973_v48, 5  ;;  %v4450_v48 = vld [vmem:[%s5927_s1 + $0x188] sm:$0xff]  }
  0x6f   : > { %4059 = vmatmul.mubr.bf16.gmra.mrb[12].mxu0 %v3535_v52  ;;  %v1838_v25 = vsel %vm5114_vm5, %v3554_v26, %v1837_v37  ;;  %v1841_v33 = vsel %vm5114_vm5, %v1839_v56, %v1840_v32  ;;  %v1847_v38 = vrot.slane %v4935_v55, 5  ;;  %v3556_v27 = vrot.slane %v3548_v49, 9  ;;  %v5177_v55 = vld [vmem:[%s4772_s28 + $0x60] sm:$0xe]  ;;  %v5204_v56 = vld [vmem:[%s4772_s28 + $0x4] sm:$0xf] }
  0x70   : > { %4078 = vmatprep.mubr.bf16.mxu0 %v3576_v1  ;;  %v1854_v40 = vrot.slane %v4982_v0, 5  ;;  %v1858_v50 = vrot.slane %v5010_v45, 5  ;;  %v3577_v31 = vcombine.low %v1831_v57, %v1834_v62  ;;  %v3578_v51 = vcombine.low %v1838_v25, %v1841_v33  ;;  %v4459_v49 = vld [vmem:[%s5927_s1 + $0xa0] sm:$0xff]   ;;  %v5259_v45 = vld [vmem:[%s4772_s28 + $0x18] sm:$0xe] }
  0x71   : > { %v1846_v37 = vrot.slane %v1844_v41, 4  ;;  %v1853_v12 = vrot.slane %v1851_v58, 4  ;;  %v3385_v0 = vcombine.low %v4899_v4, %v4906_v16  ;;  %v1845_v13 = vsel %vm5114_vm5, %v3555_v34, %v1844_v41  ;;  %v5227_v41 = vld [vmem:[%s4772_s28 + $0x10] sm:$0xf] }
  0x72   : > { %3951 = vmatmul.mubr.bf16.vlgmr.msra.gmra.mrb[0].mxu1 %v3383_v21  ;;  %v3386_v2 = vcombine.low %v4942_v5, %v4948_v9  ;;  %v3557_v59 = vrot.slane %v5164_v61, 9  ;;  %v1860_v4 = vrot.slane %v1858_v50, 4  ;;  %v1861_v19 = vrot.slane %v5023_v60, 5  ;;  %v4454_v5 = vld [vmem:[%s5927_s1 + $0x190] sm:$0xff]   ;;  %v824_v21 = vld [vmem:[%s4772_s28] sm:$0xe] }
  0x73   : > { %3967 = vmatpush3.bf16.msra.mxu1 %v5028_v18  ;;  %3954 = vmatprep.mubr.bf16.mxu1 %v3384_v39  ;;  %v4453_v18 = vld [vmem:[%s5927_s1 + $0x90] sm:$0xff]   ;;  %v3558_v1 = vrot.slane %v5174_v23, 9  ;;  %v1865_v22 = vrot.slane %v5064_v30, 5  ;;  %v1868_v26 = vrot.slane %v5069_v44, 5  ;;  %v3559_v63 = vrot.slane %v5177_v55, 9 }
  0x74   : > { %3968 = vmatprep.subr.bf16.mxu1 %v4449_v35  ;;  %v1872_v52 = vrot.slane %v5093_v3, 5  ;;  %v853_v60 = vrot.slane %v5204_v56, 5  ;;  %v1848_v30 = vsel %vm5114_vm5, %v1846_v37, %v1847_v38  ;;  %v1852_v32 = vsel %vm5114_vm5, %v3556_v27, %v1851_v58  ;;  %v827_v61 = vld [vmem:[%s4772_s28 + $0x24] sm:$0xe]  ;;  %v829_v56 = vld [vmem:[%s4772_s28 + $0x3c] sm:$0xe] }
  0x75   : > { %v1855_v44 = vsel %vm5114_vm5, %v1853_v12, %v1854_v40  ;;  %v3579_v62 = vcombine.low %v1845_v13, %v1848_v30  ;;  %v1867_v47 = vrot.slane %v1865_v22, 4  ;;  %v1875_v57 = vrot.slane %v5099_v53, 5  ;;  %v4461_v40 = vld [vmem:[%s5927_s1 + $0xa8] sm:$0xff]   ;;  %v4511_v30 = vld [vmem:[%s4772_s28 + $0x1c] sm:$0xf]  ;;  %v4466_v53 = vld [vmem:[%s5927_s1 + $0x1b0] sm:$0xff]  }
  0x76   : > { %v3580_v39 = vcombine.low %v1852_v32, %v1855_v44  ;;  %v3398_v34 = vrot.slane %v824_v21, 9  ;;  %v860_v58 = vrot.slane %v5227_v41, 5  ;;  %v874_v25 = vrot.slane %v4906_v16, 5  ;;  %v831_v41 = vld [vmem:[%s4772_s28 + $0x54] sm:$0xe] }
  0x77   : > { %4079 = vmatmul.mubr.bf16.vlgmr.msra.gmra.mrb[0].mxu0 %v3577_v31  ;;  %3969 = vmatpush3.bf16.msra.mxu1 %v4449_v35  ;;  %v5224_v35 = vrot.slane %v1872_v52, 4  ;;  %v855_v33 = vrot.slane %v853_v60, 4  ;;  %v877_v38 = vrot.slane %v4909_v17, 5  ;;  %v3387_v27 = vcombine.low %v4991_v10, %v4994_v11 }
  0x78   : > { %4095 = vmatpush3.bf16.msra.mxu0 %v5058_v15  ;;  %4082 = vmatprep.mubr.bf16.mxu0 %v3578_v51  ;;  %v4456_v15 = vld [vmem:[%s5927_s1 + $0x198] sm:$0xff]   ;;  %v3388_v31 = vcombine.low %v5036_v42, %v5042_v46  ;;  %v3401_v16 = vrot.slane %v827_v61, 9  ;;  %v876_v23 = vrot.slane %v874_v25, 4  ;;  %v1859_v17 = vsel %vm5114_vm5, %v3557_v59, %v1858_v50  ;;  %v4460_v51 = vld [vmem:[%s5927_s1 + $0x1a0] sm:$0xff]  }
  0x79   : > { %4096 = vmatprep.subr.bf16.mxu0 %v4450_v48  ;;  %3970 = vmatprep.subr.bf16.mxu1 %v4453_v18  ;;  %v1862_v10 = vsel %vm5114_vm5, %v1860_v4, %v1861_v19  ;;  %v1866_v42 = vsel %vm5114_vm5, %v3558_v1, %v1865_v22  ;;  %v1869_v37 = vsel %vm5114_vm5, %v1867_v47, %v1868_v26  ;;  %v881_v13 = vrot.slane %v4948_v9, 5  ;;  %v828_v4 = vld [vmem:[%s4772_s28 + $0x30] sm:$0xe]  ;;  %v4462_v1 = vld [vmem:[%s5927_s1 + $0x1a8] sm:$0xff]  }
  0x7a   : > { %3955 = vmatmul.mubr.bf16.gmra.mrb[4].mxu1 %v3385_v0  ;;  %v5263_v50 = vsel %vm5114_vm5, %v3401_v16, %v874_v25  ;;  %v5267_v12 = vsel %vm5114_vm5, %v876_v23, %v877_v38  ;;  %v3389_v59 = vcombine.low %v5072_v8, %v5075_v6  ;;  %v884_v19 = vrot.slane %v4958_v29, 5  ;;  %v4465_v29 = vld [vmem:[%s5927_s1 + $0xb0] sm:$0xff]   ;;  %v4468_v16 = vld [vmem:[%s5927_s1 + $0x1b8] sm:$0xff]  }
  0x7b   : > { %3971 = vmatpush3.bf16.msra.mxu1 %v4453_v18  ;;  %3958 = vmatprep.mubr.bf16.mxu1 %v3386_v2  ;;  %v3425_v18 = vcombine.low %v5263_v50, %v5267_v12  ;;  %v3581_v2 = vcombine.low %v1859_v17, %v1862_v10  ;;  %v3582_v9 = vcombine.low %v1866_v42, %v1869_v37  ;;  %v3402_v8 = vrot.slane %v828_v4, 9  ;;  %v5944_v38 = vld [vmem:[#allocation9_spill] sm:$0xff]  ;;  %v4482_v12 = vld [vmem:[%s5927_s1 + $0xe0] sm:$0xff]  }
  0x7c   : > { %4097 = vmatpush3.bf16.msra.mxu0 %v4450_v48  ;;  %3972 = vmatprep.subr.bf16.mxu1 %v4455_v43  ;;  %v5243_v48 = vld [vmem:[%s4772_s28 + $0xc] sm:$0xe]  ;;  %v854_v22 = vsel %vm5114_vm5, %v3398_v34, %v853_v60  ;;  %v857_v26 = vsel %vm5114_vm5, %v855_v33, %v856_v7  ;;  %v867_v32 = vrot.slane %v4511_v30, 5  ;;  %v888_v44 = vrot.slane %v4994_v11, 5  ;;  %v5943_v60 = vld [vmem:[#allocation8_spill] sm:$0xff]  ;;  %v4467_v7 = vld [vmem:[%s5927_s1 + $0xb8] sm:$0xff]  }
  0x7d   : > { %4098 = vmatprep.subr.bf16.mxu0 %v4454_v5  ;;  %v3399_v0 = vrot.slane %v5243_v48, 9  ;;  %v891_v21 = vrot.slane %v5943_v60, 5  ;;  %v1873_v11 = vsel %vm5114_vm5, %v3559_v63, %v1872_v52  ;;  %v1876_v3 = vsel %vm5114_vm5, %v5224_v35, %v1875_v57  ;;  %v830_v35 = vld [vmem:[%s4772_s28 + $0x48] sm:$0xe] }
  0x7e   : > { %v890_v25 = vrot.slane %v888_v44, 4  ;;  %v3422_v55 = vcombine.low %v854_v22, %v857_v26  ;;  %v869_v52 = vrot.slane %v867_v32, 4  ;;  %v895_v61 = vrot.slane %v5042_v46, 5  ;;  %v5394_v26 = vld [vmem:[%s4772_s28 + $0x20] sm:$0x1]  ;;  %v4481_v50 = vld [vmem:[%s4772_s28 + $0x48] sm:$0xff]  }
  0x7f   : > { %4083 = vmatmul.mubr.bf16.gmra.mrb[4].mxu0 %v3579_v62  ;;  %3973 = vmatpush3.bf16.msra.mxu1 %v4455_v43  ;;  %v862_v43 = vrot.slane %v860_v58, 4  ;;  %v3400_v62 = vrot.slane %v5259_v45, 9  ;;  %v861_v46 = vsel %vm5114_vm5, %v3399_v0, %v860_v58  ;;  %v902_v10 = vrot.slane %v5075_v6, 5  ;;  %v4470_v6 = vld [vmem:[%s5927_s1 + $0xc0] sm:$0xff]  }
  0x80   : > { %4099 = vmatpush3.bf16.msra.mxu0 %v4454_v5  ;;  %4086 = vmatprep.mubr.bf16.mxu0 %v3580_v39  ;;  %v883_v5 = vrot.slane %v881_v13, 4  ;;  %v3403_v39 = vrot.slane %v829_v56, 9  ;;  %v5329_v33 = vsel %vm5114_vm5, %v890_v25, %v891_v21  ;;  %v897_v48 = vrot.slane %v895_v61, 4  ;;  %v4474_v56 = vld [vmem:[%s5927_s1 + $0x1c8] sm:$0xff]  }
  0x81   : > { %4100 = vmatprep.subr.bf16.mxu0 %v4456_v15  ;;  %3974 = vmatprep.subr.bf16.mxu1 %v4459_v49  ;;  %v864_v23 = vsel %vm5114_vm5, %v862_v43, %v863_v24  ;;  %v868_v17 = vsel %vm5114_vm5, %v3400_v62, %v867_v32  ;;  %v905_v58 = vrot.slane %v5084_v20, 5  ;;  %v3405_v37 = vrot.slane %v831_v41, 9  ;;  %v4473_v43 = vld [vmem:[%s5927_s1 + $0xc8] sm:$0xff]   ;;  %v3645_v62 = vld [vmem:[%s4772_s28 + $0x24] sm:$0xf] }
  0x82   : > { %3959 = vmatmul.mubr.bf16.gmra.mrb[8].mxu1 %v3387_v27  ;;  %v5304_v14 = vsel %vm5114_vm5, %v883_v5, %v884_v19  ;;  %v5325_v63 = vsel %vm5114_vm5, %v3403_v39, %v888_v44  ;;  %v898_v27 = vrot.slane %v5944_v38, 5  ;;  %v904_v45 = vrot.slane %v902_v10, 4  ;;  %v4472_v19 = vld [vmem:[%s5927_s1 + $0x1c0] sm:$0xff]   ;;  %v4476_v44 = vld [vmem:[%s5927_s1 + $0xd0] sm:$0xff]   ;;  %v5415_v25 = vld [vmem:[%s4772_s28 + $0x28] sm:$0xf] }
  0x83   : > { %3975 = vmatpush3.bf16.msra.mxu1 %v4459_v49  ;;  %3962 = vmatprep.mubr.bf16.mxu1 %v3388_v31  ;;  %v4512_v49 = vld [vmem:[%s4772_s28 + $0x20] sm:$0x1]  ;;  %v3427_v57 = vcombine.low %v5325_v63, %v5329_v33  ;;  %v3404_v31 = vrot.slane %v830_v35, 9  ;;  %v3423_v0 = vcombine.low %v861_v46, %v864_v23  ;;  %v4471_v5 = vld [vmem:[%s4772_s28 + $0x24] sm:$0xff]   ;;  %v4478_v39 = vld [vmem:[%s5927_s1 + $0x1d0] sm:$0xff]  }
  0x84   : > { %4101 = vmatpush3.bf16.msra.mxu0 %v4456_v15  ;;  %3976 = vmatprep.subr.bf16.mxu1 %v4461_v40  ;;  %v5300_v15 = vsel %vm5114_vm5, %v3402_v8, %v881_v13  ;;  %v870_v47 = vrot.slane %v4512_v49, 5  ;;  %v5364_v24 = vsel %vm5114_vm5, %v897_v48, %v898_v27  ;;  %v5373_v13 = vsel %vm5114_vm5, %v3405_v37, %v902_v10  ;;  %v4477_v35 = vld [vmem:[%s4772_s28 + $0x3c] sm:$0xff]   ;;  %v5434_v46 = vld [vmem:[%s4772_s28 + $0x34] sm:$0xf]  ;;  %v5457_v37 = vld [vmem:[%s4772_s28 + $0x38] sm:$0x1] }
  0x85   : > { %4102 = vmatprep.subr.bf16.mxu0 %v4460_v51  ;;  %v3426_v34 = vcombine.low %v5300_v15, %v5304_v14  ;;  %v5360_v54 = vsel %vm5114_vm5, %v3404_v31, %v895_v61  ;;  %v4480_v38 = vld [vmem:[%s5927_s1 + $0x1d8] sm:$0xff]   ;;  %v2391_v27 = vshll.u32 %v5415_v25, 16  ;;  %v2415_v41 = vshll.u32 %v5434_v46, 16 }
  0x86   : > { %v871_v42 = vsel %vm5114_vm5, %v869_v52, %v870_v47  ;;  %v3428_v20 = vcombine.low %v5360_v54, %v5364_v24  ;;  %v2385_v52 = vshll.u32 %v3645_v62, 16  ;;  %v2419_v10 = vshrl.u32 %v5434_v46, 16  ;;  %v4486_v54 = vld [vmem:[%s5927_s1 + $0x1e8] sm:$0xff]   ;;  %v4488_v24 = vld [vmem:[%s5927_s1 + $0xf0] sm:$0xff]  }
  0x87   : > { %4087 = vmatmul.mubr.bf16.gmra.mrb[8].mxu0 %v3581_v2  ;;  %3977 = vmatpush3.bf16.msra.mxu1 %v4461_v40  ;;  %v3583_v40 = vcombine.low %v1873_v11, %v1876_v3  ;;  %v3424_v2 = vcombine.low %v868_v17, %v871_v42  ;;  %v4479_v11 = vld [vmem:[%s5927_s1 + $0xd8] sm:$0xff]   ;;  %v5418_v3 = vld [vmem:[%s4772_s28 + $0x2c] sm:$0x1]  ;;  %v2807_v36 = vrot.slane %v5434_v46, 5 }
  0x88   : > { %4103 = vmatpush3.bf16.msra.mxu0 %v4460_v51  ;;  %4090 = vmatprep.mubr.bf16.mxu0 %v3582_v9  ;;  %v4469_v51 = vld [vmem:[%s4772_s28 + $0x18] sm:$0xff]   ;;  %v2401_v48 = vshll.u32 %v5418_v3, 16  ;;  %v2803_v46 = vrot.slane %v5418_v3, 5 }
  0x89   : > { %4104 = vmatprep.subr.bf16.mxu0 %v4462_v1  ;;  %3978 = vmatprep.subr.bf16.mxu1 %v4465_v29  ;;  %v5389_v9 = vld [vmem:[%s4772_s28 + $0x1c] sm:$0xf] }
  0x8a   : > { %3963 = vmatmul.mubr.bf16.gmra.mrb[12].mxu1 %v3389_v59  ;;  %v5377_v59 = vsel %vm5114_vm5, %v904_v45, %v905_v58  ;;  %v2367_v30 = vshll.u32 %v5389_v9, 16  ;;  %v2371_v32 = vshrl.u32 %v5389_v9, 16  ;;  %v4484_v58 = vld [vmem:[%s5927_s1 + $0x1e0] sm:$0xff]  }
  0x8b   : > { %3979 = vmatpush3.bf16.msra.mxu1 %v4465_v29  ;;  %3982 = vmatprep.mubr.bf16.mxu1 %v3422_v55  ;;  %v3429_v4 = vcombine.low %v5373_v13, %v5377_v59  ;;  %v4475_v29 = vld [vmem:[%s4772_s28 + $0x30] sm:$0xff]   ;;  %v2382_v55 = vshrl.u32 %v3645_v62, 16  ;;  %v5501_v62 = vrot.slane %v2401_v48, 5 }
  0x8c   : > { %4105 = vmatpush3.bf16.msra.mxu0 %v4462_v1  ;;  %3980 = vmatprep.subr.bf16.mxu1 %v4467_v7  ;;  %v3642_v1 = vld [vmem:[%s4772_s28 + $0x18] sm:$0xf]  ;;  %v5412_v49 = vrot.slane %v2367_v30, 5  ;;  %v2373_v47 = vrot.slane %v2371_v32, 4 }
  0x8d   : > { %4106 = vmatprep.subr.bf16.mxu0 %v4466_v53  ;;  %v2358_v22 = vshrl.u32 %v3642_v1, 16  ;;  %v2361_v8 = vshll.u32 %v3642_v1, 16  ;;  %v2384_v14 = vrot.slane %v2382_v55, 4  ;;  %v4487_v1 = vld [vmem:[%s4772_s28 + $0x60] sm:$0xff]   ;;  %v4491_v55 = vld [vmem:[%s5927_s1 + $0xf8] sm:$0xff]  }
  0x8f   : > { %4091 = vmatmul.mubr.bf16.gmra.mrb[12].mxu0 %v3583_v40  ;;  %3981 = vmatpush3.bf16.msra.mxu1 %v4467_v7  ;;  %v2360_v60 = vrot.slane %v2358_v22, 4  ;;  %v2363_v21 = vrot.slane %v2361_v8, 5  ;;  %v2377_v7 = vshll.u32 %v5394_v26, 16  ;;  %v2395_v40 = vshrl.u32 %v5415_v25, 16 }
  0x90   : > { %4107 = vmatpush3.bf16.msra.mxu0 %v4466_v53  ;;  %4110 = vmatprep.mubr.bf16.mxu0 %v4469_v51  ;;  %v3648_v53 = vld [vmem:[%s4772_s28 + $0x30] sm:$0xf]  ;;  %v5454_v51 = vrot.slane %v2391_v27, 5  ;;  %v5472_v8 = vrot.slane %v2415_v41, 5  ;;  %v5519_v27 = vld [vmem:[%s4772_s28 + $0x44] sm:$0x1] }
  0x91   : > { %4108 = vmatprep.subr.bf16.mxu0 %v4468_v16  ;;  %3998 = vmatprep.subr.bf16.mxu1 %v4470_v6  ;;  %v2364_v61 = vor.u32 %v2363_v21, %v2360_v60  ;;  %v2406_v31 = vshrl.u32 %v3648_v53, 16  ;;  %v5441_v15 = vrot.slane %v2377_v7, 5  ;;  %v2409_v17 = vshll.u32 %v3648_v53, 16 }
  0x92   : > { %3983 = vmatmul.mubr.bf16.vlgmr.msra.gmra.mrb[0].mxu1 %v3423_v0  ;;  %v2397_v42 = vrot.slane %v2395_v40, 4  ;;  %v3651_v0 = vld [vmem:[%s4772_s28 + $0x3c] sm:$0xf] }
  0x93   : > { %3999 = vmatpush3.bf16.msra.mxu1 %v4470_v6  ;;  %3986 = vmatprep.mubr.bf16.mxu1 %v3424_v2  ;;  %v5447_v23 = vrot.slane %v2364_v61, 4  ;;  %v5461_v45 = vrot.slane %v2406_v31, 4  ;;  %v2411_v22 = vrot.slane %v2409_v17, 5  ;;  %v2430_v32 = vshrl.u32 %v3651_v0, 16  ;;  %v4489_v31 = vld [vmem:[%s4772_s28 + $0x6c] sm:$0xff]  }
  0x94   : > { %4109 = vmatpush3.bf16.msra.mxu0 %v4468_v16  ;;  %4000 = vmatprep.subr.bf16.mxu1 %v4473_v43  ;;  %v4485_v16 = vld [vmem:[%s5927_s1 + $0xe8] sm:$0xff]   ;;  %v2398_v30 = vor.u32 %v2397_v42, %v5454_v51  ;;  %v2433_v63 = vshll.u32 %v3651_v0, 16 }
  0x95   : > { %4126 = vmatprep.subr.bf16.mxu0 %v4472_v19  ;;  %v2412_v53 = vor.u32 %v2411_v22, %v5461_v45  ;;  %v2432_v40 = vrot.slane %v2430_v32, 4  ;;  %v4494_v45 = vld [vmem:[%s4772_s28 + $0x18] sm:$0xff]   ;;  %v5557_v32 = vld [vmem:[%s4772_s28 + $0x64] sm:$0xf] }
  0x96   : > { %v5512_v61 = vrot.slane %v2398_v30, 4  ;;  %v3660_v30 = vld [vmem:[%s4772_s28 + $0x60] sm:$0xf] }
  0x97   : > { %4111 = vmatmul.mubr.bf16.vlgmr.msra.gmra.mrb[0].mxu0 %v4471_v5  ;;  %4001 = vmatpush3.bf16.msra.mxu1 %v4473_v43  ;;  %v5465_v43 = vld [vmem:[%s4772_s28 + $0x40] sm:$0xf]  ;;  %v2421_v5 = vrot.slane %v2419_v10, 4  ;;  %v2413_v41 = vrot.slane %v2412_v53, 4  ;;  %v2449_v10 = vshll.u32 %v5519_v27, 16 }
  0x98   : > { %4127 = vmatpush3.bf16.msra.mxu0 %v4472_v19  ;;  %4114 = vmatprep.mubr.bf16.mxu0 %v4475_v29  ;;  %v4483_v19 = vld [vmem:[%s4772_s28 + $0x54] sm:$0xff]   ;;  %v2425_v29 = vshll.u32 %v5457_v37, 16  ;;  %v2439_v33 = vshll.u32 %v5465_v43, 16  ;;  %v5585_v53 = vld [vmem:[%s4772_s28 + $0x5c] sm:$0x1] }
  0x99   : > { %4128 = vmatprep.subr.bf16.mxu0 %v4474_v56  ;;  %4002 = vmatprep.subr.bf16.mxu1 %v4476_v44 }
  0x9a   : > { %3987 = vmatmul.mubr.bf16.gmra.mrb[4].mxu1 %v3425_v18  ;;  %v2374_v18 = vor.u32 %v2373_v47, %v5412_v49 }
  0x9b   : > { %4003 = vmatpush3.bf16.msra.mxu1 %v4476_v44  ;;  %3990 = vmatprep.mubr.bf16.mxu1 %v3426_v34  ;;  %v2387_v34 = vrot.slane %v2385_v52, 5  ;;  %v5483_v44 = vld [vmem:[%s4772_s28 + $0x4c] sm:$0xf] }
  0x9c   : > { %4129 = vmatpush3.bf16.msra.mxu0 %v4474_v56  ;;  %4004 = vmatprep.subr.bf16.mxu1 %v4479_v11  ;;  %v5459_v6 = vrot.slane %v2374_v18, 4  ;;  %v3654_v56 = vld [vmem:[%s4772_s28 + $0x48] sm:$0xf]  ;;  %v2463_v7 = vshll.u32 %v5483_v44, 16  ;;  %v2467_v47 = vshrl.u32 %v5483_v44, 16  ;;  %v4493_v52 = vld [vmem:[%s4772_s28 + $0xc] sm:$0xff]  }
  0x9d   : > { %4130 = vmatprep.subr.bf16.mxu0 %v4478_v39  ;;  %v2388_v2 = vor.u32 %v2387_v34, %v2384_v14 }
  0x9e   : > { %v2380_v60 = vsel %vm4817_vm2, %v5459_v6, %v5441_v15  ;;  %v5525_v15 = vld [vmem:[%s4772_s28 + $0x50] sm:$0x1]  ;;  %v5530_v48 = vrot.slane %v2463_v7, 5  ;;  %v5540_v6 = vld [vmem:[%s4772_s28 + $0x58] sm:$0xf] }
  0x9f   : > { %4115 = vmatmul.mubr.bf16.gmra.mrb[4].mxu0 %v4477_v35  ;;  %4005 = vmatpush3.bf16.msra.mxu1 %v4479_v11  ;;  %v5499_v21 = vrot.slane %v2388_v2, 4  ;;  %v2457_v11 = vshll.u32 %v3654_v56, 16  ;;  %v2422_v35 = vor.u32 %v2421_v5, %v5472_v8  ;;  %v2473_v42 = vshll.u32 %v5525_v15, 16 }
  0xa0   : > { %4131 = vmatpush3.bf16.msra.mxu0 %v4478_v39  ;;  %4118 = vmatprep.mubr.bf16.mxu0 %v4481_v50  ;;  %v2454_v39 = vshrl.u32 %v3654_v56, 16  ;;  %v2435_v50 = vrot.slane %v2433_v63, 5  ;;  %v2404_v2 = vsel %vm4817_vm2, %v5512_v61, %v5501_v62  ;;  %v2418_v63 = vsel %vm4817_vm2, %v2413_v41, %v5472_v8  ;;  %v5582_v61 = vld [vmem:[%s5927_s1 + $0x210] sm:$0xff]  }
  0xa1   : > { %4132 = vmatprep.subr.bf16.mxu0 %v4480_v38  ;;  %4006 = vmatprep.subr.bf16.mxu1 %v4482_v12  ;;  %v2459_v34 = vrot.slane %v2457_v11, 5  ;;  %v2423_v13 = vrot.slane %v2422_v35, 4  ;;  %v2394_v0 = vsel %vm4817_vm2, %v5499_v21, %v5454_v51  ;;  %v4497_v51 = vld [vmem:[%s4772_s28 + $0x24] sm:$0xff]   ;;  %v2491_v56 = vshrl.u32 %v5540_v6, 16 }
  0xa2   : > { %3991 = vmatmul.mubr.bf16.gmra.mrb[8].mxu1 %v3427_v57  ;;  %v2443_v57 = vshrl.u32 %v5465_v43, 16  ;;  %v2456_v14 = vrot.slane %v2454_v39, 4  ;;  %v2436_v59 = vor.u32 %v2435_v50, %v2432_v40  ;;  %v5575_v8 = vrot.slane %v2473_v42, 5  ;;  %v3663_v50 = vld [vmem:[%s4772_s28 + $0x6c] sm:$0xf] }
  0xa3   : > { %4007 = vmatpush3.bf16.msra.mxu1 %v4482_v12  ;;  %3994 = vmatprep.mubr.bf16.mxu1 %v3428_v20  ;;  %v2370_v20 = vsel %vm4817_vm2, %v5447_v23, %v5412_v49  ;;  %v4490_v49 = vld [vmem:[%s5927_s1 + $0x1f0] sm:$0xff]   ;;  %v5521_v12 = vrot.slane %v2439_v33, 5  ;;  %v4492_v23 = vld [vmem:[%s5927_s1 + $0x1f8] sm:$0xff]   ;;  %v5563_v33 = vrot.slane %v2449_v10, 5  ;;  %v2502_v21 = vshrl.u32 %v3660_v30, 16 }
  0xa4   : > { %4133 = vmatpush3.bf16.msra.mxu0 %v4480_v38  ;;  %4008 = vmatprep.subr.bf16.mxu1 %v4485_v16  ;;  %v5516_v38 = vrot.slane %v2425_v29, 5  ;;  %v2445_v18 = vrot.slane %v2443_v57, 4  ;;  %v3682_v17 = vcombine.low %v2370_v20, %v2380_v60  ;;  %v2487_v57 = vshll.u32 %v5540_v6, 16 }
  0xa5   : > { %4134 = vmatprep.subr.bf16.mxu0 %v4484_v58  ;;  %v2437_v20 = vrot.slane %v2436_v59, 4  ;;  %v2505_v62 = vshll.u32 %v3660_v30, 16  ;;  %v2511_v39 = vshll.u32 %v5557_v32, 16  ;;  %v2515_v11 = vshrl.u32 %v5557_v32, 16 }
  0xa6   : > { %v5587_v35 = vrot.slane %v2487_v57, 5  ;;  %v2526_v59 = vshrl.u32 %v3663_v50, 16 }
  0xa7   : > { %4119 = vmatmul.mubr.bf16.gmra.mrb[8].mxu0 %v4483_v19  ;;  %4009 = vmatpush3.bf16.msra.mxu1 %v4485_v16  ;;  %v2469_v16 = vrot.slane %v2467_v47, 4  ;;  %v4495_v19 = vld [vmem:[%s5927_s1 + $0x200] sm:$0xff]   ;;  %v2442_v41 = vsel %vm4817_vm2, %v2437_v20, %v5521_v12 }
  0xa8   : > { %4135 = vmatpush3.bf16.msra.mxu0 %v4484_v58  ;;  %4122 = vmatprep.mubr.bf16.mxu0 %v4487_v1  ;;  %v3657_v58 = vld [vmem:[%s4772_s28 + $0x54] sm:$0xf]  ;;  %v2460_v1 = vor.u32 %v2459_v34, %v2456_v14  ;;  %v2507_v14 = vrot.slane %v2505_v62, 5  ;;  %v5594_v34 = vrot.slane %v2511_v39, 5 }
  0xa9   : > { %4136 = vmatprep.subr.bf16.mxu0 %v4486_v54  ;;  %4010 = vmatprep.subr.bf16.mxu1 %v4488_v24  ;;  %v2470_v22 = vor.u32 %v2469_v16, %v5530_v48  ;;  %v2478_v5 = vshrl.u32 %v3657_v58, 16  ;;  %v2481_v29 = vshll.u32 %v3657_v58, 16  ;;  %v2517_v16 = vrot.slane %v2515_v11, 4  ;;  %v5604_v58 = vld [vmem:[%s4772_s28 + $0x68] sm:$0x1] }
  0xaa   : > { %3995 = vmatmul.mubr.bf16.gmra.mrb[12].mxu1 %v3429_v4  ;;  %v2446_v4 = vor.u32 %v2445_v18, %v5521_v12  ;;  %v2461_v7 = vrot.slane %v2460_v1, 4  ;;  %v5592_v18 = vld [vmem:[%s4772_s28 + $0x70] sm:$0xf]  ;;  %v5613_v12 = vld [vmem:[%s5927_s1 + $0x218] sm:$0xff]   ;;  %v2497_v1 = vshll.u32 %v5585_v53, 16 }
  0xab   : > { %4011 = vmatpush3.bf16.msra.mxu1 %v4488_v24  ;;  %4014 = vmatprep.mubr.bf16.mxu1 %v4493_v52  ;;  %v2428_v24 = vsel %vm4817_vm2, %v2423_v13, %v5516_v38  ;;  %v2471_v47 = vrot.slane %v2470_v22, 4  ;;  %v3683_v52 = vcombine.low %v2394_v0, %v2404_v2  ;;  %v2493_v38 = vrot.slane %v2491_v56, 4  ;;  %v4501_v13 = vld [vmem:[%s4772_s28 + $0x3c] sm:$0xff]   ;;  %v3702_v11 = vld [vmem:[%s4772_s28 + $0x48] sm:$0xe] }
  0xac   : > { %4137 = vmatpush3.bf16.msra.mxu0 %v4486_v54  ;;  %4012 = vmatprep.subr.bf16.mxu1 %v4491_v55  ;;  %v5570_v54 = vld [vmem:[%s5927_s1 + $0x208] sm:$0xff]   ;;  %v2447_v60 = vrot.slane %v2446_v4, 4  ;;  %v3684_v40 = vcombine.low %v2418_v63, %v2428_v24  ;;  %v2529_v4 = vshll.u32 %v3663_v50, 16  ;;  %v2535_v42 = vshll.u32 %v5592_v18, 16 }
  0xad   : > { %4138 = vmatprep.subr.bf16.mxu0 %v4490_v49  ;;  %v2466_v0 = vsel %vm4817_vm2, %v2461_v7, %v5530_v48  ;;  %v2494_v2 = vor.u32 %v2493_v38, %v5587_v35  ;;  %v2499_v20 = vrot.slane %v2497_v1, 5  ;;  %v4502_v7 = vld [vmem:[%s4772_s28 + $0x48] sm:$0xff]  }
  0xae   : > { %v2531_v63 = vrot.slane %v2529_v4, 5  ;;  %v4504_v50 = vld [vmem:[%s5927_s1 + $0x228] sm:$0xff]  }
  0xaf   : > { %4123 = vmatmul.mubr.bf16.gmra.mrb[12].mxu0 %v4489_v31  ;;  %4013 = vmatpush3.bf16.msra.mxu1 %v4491_v55  ;;  %v2483_v55 = vrot.slane %v2481_v29, 5  ;;  %v2504_v31 = vrot.slane %v2502_v21, 4  ;;  %v2521_v29 = vshll.u32 %v5604_v58, 16  ;;  %v2495_v24 = vrot.slane %v2494_v2, 4  ;;  %v4503_v21 = vld [vmem:[%s5927_s1 + $0x220] sm:$0xff]  }
  0xb0   : > { %4139 = vmatpush3.bf16.msra.mxu0 %v4490_v49  ;;  %4142 = vmatprep.mubr.bf16.mxu0 %v3682_v17  ;;  %v2480_v49 = vrot.slane %v2478_v5, 4  ;;  %v4498_v17 = vld [vmem:[%s4772_s28 + $0x30] sm:$0xff]   ;;  %v2518_v5 = vor.u32 %v2517_v16, %v5594_v34  ;;  %v3704_v2 = vld [vmem:[%s4772_s28 + $0x60] sm:$0xe] }
  0xb1   : > { %4140 = vmatprep.subr.bf16.mxu0 %v4492_v23  ;;  %4190 = vmatprep.subr.bf16.mxu1 %v4495_v19  ;;  %v2508_v22 = vor.u32 %v2507_v14, %v2504_v31  ;;  %v3710_v31 = vrot.slane %v3702_v11, 9 }
  0xb2   : > { %4015 = vmatmul.mubr.bf16.vlgmr.msra.gmra.mrb[0].mxu1 %v4494_v45  ;;  %v2484_v10 = vor.u32 %v2483_v55, %v2480_v49  ;;  %v2539_v45 = vshrl.u32 %v5592_v18, 16  ;;  %v2519_v39 = vrot.slane %v2518_v5, 4  ;;  %v4505_v49 = vld [vmem:[%s4772_s28 + $0x54] sm:$0xff]  }
  0xb3   : > { %4198 = vmatpush3.bf16.msra.mxu1 %v4495_v19  ;;  %4018 = vmatprep.mubr.bf16.mxu1 %v4497_v51  ;;  %v2528_v51 = vrot.slane %v2526_v59, 4  ;;  %v2509_v62 = vrot.slane %v2508_v22, 4 }
  0xb4   : > { %4141 = vmatpush3.bf16.msra.mxu0 %v4492_v23  ;;  %4191 = vmatprep.subr.bf16.mxu1 %v5570_v54  ;;  %v2452_v23 = vsel %vm4817_vm2, %v2447_v60, %v5563_v33  ;;  %v2485_v30 = vrot.slane %v2484_v10, 4  ;;  %v5628_v33 = vrot.slane %v2535_v42, 5  ;;  %v2541_v57 = vrot.slane %v2539_v45, 4  ;;  %v5633_v60 = vld [vmem:[%s4772_s28 + $0x74] sm:$0x1] }
  0xb5   : > { %4158 = vmatprep.subr.bf16.mxu0 %v4495_v19  ;;  %v3685_v48 = vcombine.low %v2442_v41, %v2452_v23  ;;  %v2532_v55 = vor.u32 %v2531_v63, %v2528_v51  ;;  %v2545_v38 = vshll.u32 %v5633_v60, 16  ;;  %v2514_v16 = vsel %vm4817_vm2, %v2509_v62, %v5594_v34  ;;  %v4508_v51 = vld [vmem:[%s5927_s1 + $0x238] sm:$0xff]  }
  0xb6   : > { %v2796_v10 = vrot.slane %v5394_v26, 5  ;;  %v3703_v26 = vld [vmem:[%s4772_s28 + $0x54] sm:$0xe]  ;;  %v2835_v45 = vrot.slane %v5557_v32, 5  ;;  %v2800_v63 = vrot.slane %v5415_v25, 5  ;;  %v2845_v3 = vrot.slane %v5633_v60, 5 }
  0xb7   : > { %4143 = vmatmul.mubr.bf16.vlgmr.msra.gmra.mrb[0].mxu0 %v3683_v52  ;;  %4199 = vmatpush3.bf16.msra.mxu1 %v5570_v54  ;;  %v2542_v52 = vor.u32 %v2541_v57, %v5628_v33  ;;  %v2547_v4 = vrot.slane %v2545_v38, 5  ;;  %v3712_v57 = vrot.slane %v3704_v2, 9 }
  0xb8   : > { %4159 = vmatpush3.bf16.msra.mxu0 %v4495_v19  ;;  %4146 = vmatprep.mubr.bf16.mxu0 %v3684_v40  ;;  %v2476_v19 = vsel %vm4817_vm2, %v2471_v47, %v5575_v8  ;;  %v2821_v8 = vrot.slane %v5483_v44, 5  ;;  %v2793_v47 = vrot.slane %v5389_v9, 5  ;;  %v2490_v44 = vsel %vm4817_vm2, %v2485_v30, %v5587_v35  ;;  %v3698_v40 = vld [vmem:[%s4772_s28 + $0x18] sm:$0xe]  ;;  %v3699_v30 = vld [vmem:[%s4772_s28 + $0x24] sm:$0xe] }
  0xb9   : > { %4160 = vmatprep.subr.bf16.mxu0 %v5570_v54  ;;  %4192 = vmatprep.subr.bf16.mxu1 %v5582_v61  ;;  %v3686_v56 = vcombine.low %v2466_v0, %v2476_v19  ;;  %v2500_v9 = vsel %vm4817_vm2, %v2495_v24, %v2499_v20  ;;  %v2824_v35 = vrot.slane %v5525_v15, 5  ;;  %v3706_v41 = vrot.slane %v3698_v40, 9  ;;  %v4507_v0 = vld [vmem:[%s5927_s1 + $0x230] sm:$0xff]   ;;  %v4506_v19 = vld [vmem:[%s4772_s28 + $0x60] sm:$0xff]  }
  0xba   : > { %4019 = vmatmul.mubr.bf16.gmra.mrb[4].mxu1 %v4498_v17  ;;  %v2823_v14 = vrot.slane %v2821_v8, 4  ;;  %v2828_v17 = vrot.slane %v5540_v6, 5  ;;  %v2795_v23 = vrot.slane %v2793_v47, 4  ;;  %v3687_v15 = vcombine.low %v2490_v44, %v2500_v9 }
  0xbb   : > { %4200 = vmatpush3.bf16.msra.mxu1 %v5582_v61  ;;  %4022 = vmatprep.mubr.bf16.mxu1 %v4501_v13  ;;  %v2533_v13 = vrot.slane %v2532_v55, 4  ;;  %v2543_v59 = vrot.slane %v2542_v52, 4  ;;  %v2822_v42 = vsel %vm5114_vm5, %v3710_v31, %v2821_v8  ;;  %v2794_v22 = vsel %vm5114_vm5, %v3706_v41, %v2793_v47  ;;  %v3700_v8 = vld [vmem:[%s4772_s28 + $0x30] sm:$0xe] }
  0xbc   : > { %4161 = vmatpush3.bf16.msra.mxu0 %v5570_v54  ;;  %4193 = vmatprep.subr.bf16.mxu1 %v5613_v12  ;;  %v2523_v54 = vrot.slane %v2521_v29, 5  ;;  %v2825_v6 = vsel %vm5114_vm5, %v2823_v14, %v2824_v35  ;;  %v2830_v1 = vrot.slane %v2828_v17, 4  ;;  %v2797_v5 = vsel %vm5114_vm5, %v2795_v23, %v2796_v10  ;;  %v3701_v14 = vld [vmem:[%s4772_s28 + $0x3c] sm:$0xe] }
  0xbd   : > { %4162 = vmatprep.subr.bf16.mxu0 %v5582_v61  ;;  %v2538_v32 = vsel %vm4817_vm2, %v2533_v13, %v5628_v33  ;;  %v2548_v29 = vsel %vm4817_vm2, %v2543_v59, %v2547_v4  ;;  %v2838_v24 = vrot.slane %v5604_v58, 5  ;;  %v3707_v33 = vrot.slane %v3699_v30, 9 }
  0xbe   : > { %v3730_v62 = vcombine.low %v2794_v22, %v2797_v5  ;;  %v2842_v58 = vrot.slane %v5592_v18, 5  ;;  %v3708_v47 = vrot.slane %v3700_v8, 9  ;;  %v2809_v44 = vrot.slane %v2807_v36, 4 }
  0xbf   : > { %4147 = vmatmul.mubr.bf16.gmra.mrb[4].mxu0 %v3685_v48  ;;  %4201 = vmatpush3.bf16.msra.mxu1 %v5613_v12  ;;  %v3734_v48 = vcombine.low %v2822_v42, %v2825_v6  ;;  %v2801_v40 = vsel %vm5114_vm5, %v3707_v33, %v2800_v63  ;;  %v2817_v41 = vrot.slane %v5519_v27, 5 }
  0xc0   : > { %4163 = vmatpush3.bf16.msra.mxu0 %v5582_v61  ;;  %4150 = vmatprep.mubr.bf16.mxu0 %v3686_v56  ;;  %v2524_v61 = vsel %vm4817_vm2, %v2519_v39, %v2523_v54  ;;  %v2837_v56 = vrot.slane %v2835_v45, 4  ;;  %v2802_v39 = vrot.slane %v2800_v63, 4  ;;  %v2836_v54 = vsel %vm5114_vm5, %v3712_v57, %v2835_v45 }
  0xc1   : > { %4164 = vmatprep.subr.bf16.mxu0 %v5613_v12  ;;  %4194 = vmatprep.subr.bf16.mxu1 %v4503_v21  ;;  %v3688_v34 = vcombine.low %v2514_v16, %v2524_v61  ;;  %v2844_v38 = vrot.slane %v2842_v58, 4 }
  0xc2   : > { %4023 = vmatmul.mubr.bf16.gmra.mrb[8].mxu1 %v4502_v7  ;;  %v2839_v11 = vsel %vm5114_vm5, %v2837_v56, %v2838_v24  ;;  %v3705_v7 = vld [vmem:[%s4772_s28 + $0x6c] sm:$0xe]  ;;  %v2804_v9 = vsel %vm5114_vm5, %v2802_v39, %v2803_v46  ;;  %s5737_s28 = sand.u32 1, %s4615_s13  }
  0xc3   : > { %4202 = vmatpush3.bf16.msra.mxu1 %v4503_v21  ;;  %4026 = vmatprep.mubr.bf16.mxu1 %v4505_v49  ;;  %v2810_v49 = vrot.slane %v5457_v37, 5  ;;  %v3736_v18 = vcombine.low %v2836_v54, %v2839_v11  ;;  %v3713_v52 = vrot.slane %v3705_v7, 9  ;;  %v2808_v37 = vsel %vm5114_vm5, %v3708_v47, %v2807_v36  ;;  %s3344_s11 = sshll.u32 %s5737_s28, 7  ;;  %s3183_s8 = scalar_lea.sflag [#allocation3], %s5737_s28 }
  0xc4   : > { %4165 = vmatpush3.bf16.msra.mxu0 %v5613_v12  ;;  %4195 = vmatprep.subr.bf16.mxu1 %v4504_v50  ;;  %v2831_v12 = vrot.slane %v5585_v53, 5  ;;  %v3711_v53 = vrot.slane %v3703_v26, 9  ;;  %v3731_v60 = vcombine.low %v2801_v40, %v2804_v9  ;;  %v2846_v16 = vsel %vm5114_vm5, %v2844_v38, %v2845_v3  ;;  %s5747_s10 = scalar_lea.vmem [#allocation2], %s3344_s11  ;;  %s4641_s11 = smov [#allocation2]  }
  0xc5   : > { %4166 = vmatprep.subr.bf16.mxu0 %v4503_v21  ;;  %v2811_v31 = vsel %vm5114_vm5, %v2809_v44, %v2810_v49  ;;  %v2843_v35 = vsel %vm5114_vm5, %v3713_v52, %v2842_v58  ;;  %v5741_v58 = vstv %s3347_s20  ;;  %s3204_s5 = sshll.u32 %s5747_s10, 4  ;;  %s4517_s20 = sshll.u32 %s4641_s11, 4  ;;  %s5812_s5 = int_to_ptr.vmem [resolvable:$true] %s3204_s5  ;;  %s4518_s20 = int_to_ptr.vmem [resolvable:$false] %s4517_s20 }
  0xc6   : > { %v2832_v20 = vsel %vm5114_vm5, %v2830_v1, %v2831_v12  ;;  %v2829_v25 = vsel %vm5114_vm5, %v3711_v53, %v2828_v17  ;;  %v3732_v61 = vcombine.low %v2808_v37, %v2811_v31  ;;  %v3737_v23 = vcombine.low %v2843_v35, %v2846_v16  ;;  %s4513_s9 = scalar_lea.vmem %s5812_s5, 2048  ;;  %s4519_s21 = scalar_lea.vmem %s4518_s20, 4096 }
  0xc7   : > { %4151 = vmatmul.mubr.bf16.gmra.mrb[8].mxu0 %v3687_v15  ;;  %4203 = vmatpush3.bf16.msra.mxu1 %v4504_v50  ;;  %v3735_v55 = vcombine.low %v2829_v25, %v2832_v20  ;;  %v3074_v44 = vadd.s32 1, %v5741_v58  ;;  %vm3081_vm6 = vcmp.lt.s32.totalorder %v5741_v58, 16  ;;  %p4514_p13 = scmp.ne.s32.totalorder %s5812_s5, %s4513_s9  ;;  %p4520_p2 = scmp.lt.s32.totalorder %s5812_s5, %s4518_s20 }
  0xc8   : > { %4167 = vmatpush3.bf16.msra.mxu0 %v4503_v21  ;;  %4154 = vmatprep.mubr.bf16.mxu0 %v3688_v34  ;;  %v3689_v21 = vcombine.low %v2538_v32, %v2548_v29  ;;  %p4521_p4 = scmp.lt.s32.totalorder %s4519_s21, %s4513_s9 }
  0xc9   : > { %4168 = vmatprep.subr.bf16.mxu0 %v4504_v50  ;;  %4196 = vmatprep.subr.bf16.mxu1 %v4507_v0  ;;  %vm3082_vm7 = vcmp.lt.s32.totalorder %v3074_v44, 16  ;;  %p4515_p0 = pnand %p4514_p13, %p4716_p3 }
  0xca   : > { %4027 = vmatmul.mubr.bf16.gmra.mrb[12].mxu1 %v4506_v19  ;;  %p4522_p5 = por %p4521_p4, %p4520_p2 }
  0xcb   : > { %4204 = vmatpush3.bf16.msra.mxu1 %v4507_v0  ;;  %4182 = vmatprep.mubr.bf16.mxu1 %v3734_v48  ;;  %p4516_p1 = pneg %p4515_p0 }
  0xcc   : > { %4169 = vmatpush3.bf16.msra.mxu0 %v4504_v50  ;;  %4197 = vmatprep.subr.bf16.mxu1 %v4508_v51  ;;  %v2814_v50 = vrot.slane %v5465_v43, 5  ;;  %v3709_v43 = vrot.slane %v3701_v14, 9 }
  0xcd   : > { %4170 = vmatprep.subr.bf16.mxu0 %v4507_v0  ;;  %p4523_p6 = pnand %p4522_p5, %p4516_p1 }
  0xce   : > { %v2816_v17 = vrot.slane %v2814_v50, 4  ;;  %v2815_v10 = vsel %vm5114_vm5, %v3709_v43, %v2814_v50 }
  0xcf   : > { %4155 = vmatmul.mubr.bf16.gmra.mrb[12].mxu0 %v3689_v21  ;;  %4205 = vmatpush3.bf16.msra.mxu1 %v4508_v51 }
  0xd0   : > { %4171 = vmatpush3.bf16.msra.mxu0 %v4507_v0  ;;  %4174 = vmatprep.mubr.bf16.mxu0 %v3730_v62  ;;  %v2818_v15 = vsel %vm5114_vm5, %v2816_v17, %v2817_v41  ;;  %v5782_v41 = vadd.s32 3, %v5741_v58 }
  0xd1   : > { %4172 = vmatprep.subr.bf16.mxu0 %v4508_v51  ;;  %v3733_v13 = vcombine.low %v2815_v10, %v2818_v15 }
  0xd2   : > { %4183 = vmatmul.mubr.bf16.vlgmr.msra.gmra.mrb[16].mxu1 %v3735_v55  ;;  %vm3084_vm9 = vcmp.lt.s32.totalorder %v5782_v41, 16 }
  0xd3   : > { %4186 = vmatprep.mubr.bf16.mxu1 %v3736_v18 }
  0xd4   : > { %4173 = vmatpush3.bf16.msra.mxu0 %v4508_v51 }
  0xd7   : > { %4175 = vmatmul.mubr.bf16.vlgmr.msra.gmra.mrb[0].mxu0 %v3731_v60  ;;  %v3075_v60 = vadd.s32 2, %v5741_v58 }
  0xd8   : > { %4178 = vmatprep.mubr.bf16.mxu0 %v3732_v61 }
  0xd9   : > { %vm3083_vm8 = vcmp.lt.s32.totalorder %v3075_v60, 16 }
  0xda   : > { %4187 = vmatmul.mubr.bf16.gmra.mrb[20].mxu1 %v3737_v23 }
  0xdf   : > { %4179 = vmatmul.mubr.bf16.gmra.mrb[4].mxu0 %v3733_v13 }
 0x185   : > { %v4016_v59 = vpop.f32.mrb[0].mxu1 }
 0x186   : > { %v1284_v4 = vpop.f32.mrb[1].mxu1 }
 0x187   : > { %v4017_v34 = vpop.f32.mrb[2].mxu1 }
 0x188   : > { %v1287_v42 = vpop.f32.mrb[3].mxu1 }
 0x18d   : > { %v5728_v6 = vpop.f32.mrb[4].mxu1 }
 0x18e   : > { %v5730_v26 = vpop.f32.mrb[5].mxu1 }
 0x18f   : > { %v5732_v27 = vpop.f32.mrb[6].mxu1 }
 0x190   : > { %v5734_v45 = vpop.f32.mrb[7].mxu1 }
 0x195   : > { %v4024_v0 = vpop.f32.mrb[8].mxu1 }
 0x196   : > { %v1316_v2 = vpop.f32.mrb[9].mxu1 }
 0x197   : > { %v4025_v28 = vpop.f32.mrb[10].mxu1 }
 0x198   : > { %v1319_v1 = vpop.f32.mrb[11].mxu1 }
 0x19a   : > { %v4152_v12 = vpop.f32.mrb[8].mxu0 }
 0x19b   : > { %v4214_v19 = vadd.f32 %v4152_v12, %v4024_v0  ;;  %v2712_v22 = vpop.f32.mrb[9].mxu0 }
 0x19c   : > { %v4216_v5 = vadd.f32 %v2712_v22, %v1316_v2  ;;  %v4153_v32 = vpop.f32.mrb[10].mxu0 }
 0x19d   : > { %v4218_v29 = vadd.f32 %v4153_v32, %v4025_v28  ;;  %v2715_v48 = vpop.f32.mrb[11].mxu0  ;;  %v4028_v30 = vpop.f32.mrb[12].mxu1 }
 0x19e   : > { %v4220_v53 = vadd.f32 %v2715_v48, %v1319_v1  ;;  %v1332_v51 = vpop.f32.mrb[13].mxu1 }
 0x19f   : > { %v4029_v63 = vpop.f32.mrb[14].mxu1 }
 0x1a0   : > { %v1335_v57 = vpop.f32.mrb[15].mxu1 }
 0x1a2   : > { %v4156_v56 = vpop.f32.mrb[12].mxu0 }
 0x1a3   : > { %v4222_v24 = vadd.f32 %v4156_v56, %v4028_v30  ;;  %v2728_v36 = vpop.f32.mrb[13].mxu0 }
 0x1a4   : > { %v4224_v33 = vadd.f32 %v2728_v36, %v1332_v51  ;;  %v4157_v20 = vpop.f32.mrb[14].mxu0 }
 0x1a5   : > { %v4226_v8 = vadd.f32 %v4157_v20, %v4029_v63  ;;  %v2731_v21 = vpop.f32.mrb[15].mxu0  ;;  %v4184_v62 = vpop.f32.mrb[16].mxu1 }
 0x1a6   : > { %v4228_v25 = vadd.f32 %v2731_v21, %v1335_v57  ;;  %v5743_v39 = vadd.f32 %v4214_v19, %v4184_v62  ;;  %v3010_v46 = vpop.f32.mrb[17].mxu1  ;;  %v5799_v19 = vadd.s32 4, %v5741_v58  ;;  %v3078_v57 = vadd.s32 5, %v5741_v58 }
 0x1a7   : > { %v5745_v54 = vadd.f32 %v4216_v5, %v3010_v46  ;;  %v4185_v11 = vpop.f32.mrb[18].mxu1 }
 0x1a8   : > { %3067 = vst [vmem:[%s5747_s10 + $0x50] sm:$0xff] %v5743_v39  ;;  %v5751_v7 = vadd.f32 %v4218_v29, %v4185_v11  ;;  %v3013_v47 = vpop.f32.mrb[19].mxu1  ;;  %vm3085_vm10 = vcmp.lt.s32.totalorder %v5799_v19, 16 }
 0x1a9   : > { %3065 = vst [vmem:[%s5747_s10 + $0x40] sm:$0xff] %v5745_v54  ;;  %v5756_v49 = vadd.f32 %v4220_v53, %v3013_v47 }
 0x1aa   : > { %v4176_v55 = vpop.f32.mrb[0].mxu0  ;;  %3068 = vst [vmem:[%s5747_s10 + $0x58] sm:$0xff] %v5751_v7 }
 0x1ab   : > { %v4206_v18 = vadd.f32 %v4176_v55, %v4016_v59  ;;  %v2978_v52 = vpop.f32.mrb[1].mxu0  ;;  %3066 = vst [vmem:[%s5747_s10 + $0x48] sm:$0xff] %v5756_v49 }
 0x1ac   : > { %v4207_v38 = vadd.f32 %v2978_v52, %v1284_v4  ;;  %v4177_v3 = vpop.f32.mrb[2].mxu0 }
 0x1ad   : > { %3059 = vst [vmem:[%s5747_s10 + $0x10] sm:$0xff] %v4206_v18  ;;  %v4208_v40 = vadd.f32 %v4177_v3, %v4017_v34  ;;  %v2981_v9 = vpop.f32.mrb[3].mxu0  ;;  %v4188_v50 = vpop.f32.mrb[20].mxu1  ;;  %v3107_v43 = vsel %vm3082_vm7, %v4206_v18, 0.0 }
 0x1ae   : > { %3057 = vst [vmem:[%s5747_s10] sm:$0xff] %v4207_v38  ;;  %v3105_v37 = vsel %vm3081_vm6, %v4207_v38, 0.0  ;;  %v4209_v31 = vadd.f32 %v2981_v9, %v1287_v42  ;;  %v5769_v14 = vadd.f32 %v4222_v24, %v4188_v50  ;;  %v3026_v35 = vpop.f32.mrb[21].mxu1  ;;  %v3144_v0 = vmul.f32 %v3107_v43, %v3107_v43 }
 0x1af   : > { %3060 = vst [vmem:[%s5747_s10 + $0x18] sm:$0xff] %v4208_v40  ;;  %v5773_v16 = vadd.f32 %v4224_v33, %v3026_v35  ;;  %v4189_v61 = vpop.f32.mrb[22].mxu1  ;;  %v3142_v15 = vmul.f32 %v3105_v37, %v3105_v37  ;;  %v3108_v4 = vsel %vm3082_vm7, %v4208_v40, 0.0 }
 0x1b0   : > { %3058 = vst [vmem:[%s5747_s10 + $0x8] sm:$0xff] %v4209_v31  ;;  %v3106_v17 = vsel %vm3081_vm6, %v4209_v31, 0.0  ;;  %3071 = vst [vmem:[%s5747_s10 + $0x70] sm:$0xff] %v5769_v14  ;;  %v5786_v23 = vadd.f32 %v4226_v8, %v4189_v61  ;;  %v3029_v10 = vpop.f32.mrb[23].mxu1  ;;  %v3145_v32 = vmul.f32 %v3108_v4, %v3108_v4 }
 0x1b1   : > { %v3121_v13 = vadd.f32 %v3106_v17, %v3105_v37  ;;  %v3143_v59 = vmul.f32 %v3106_v17, %v3106_v17  ;;  %3069 = vst [vmem:[%s5747_s10 + $0x60] sm:$0xff] %v5773_v16  ;;  %v5793_v42 = vadd.f32 %v4228_v25, %v3029_v10 }
 0x1b2   : > { %v4180_v34 = vpop.f32.mrb[4].mxu0  ;;  %3072 = vst [vmem:[%s5747_s10 + $0x78] sm:$0xff] %v5786_v23 }
 0x1b3   : > { %v3122_v2 = vadd.f32 %v3121_v13, %v3107_v43  ;;  %v3158_v28 = vadd.f32 %v3143_v59, %v3142_v15  ;;  %v4210_v1 = vadd.f32 %v4180_v34, %v5728_v6  ;;  %v2994_v12 = vpop.f32.mrb[5].mxu0  ;;  %3070 = vst [vmem:[%s5747_s10 + $0x68] sm:$0xff] %v5793_v42 }
 0x1b4   : > { %v4211_v22 = vadd.f32 %v2994_v12, %v5730_v26  ;;  %v4181_v5 = vpop.f32.mrb[6].mxu0 }
 0x1b5   : > { %v3159_v29 = vadd.f32 %v3158_v28, %v3144_v0  ;;  %3063 = vst [vmem:[%s5747_s10 + $0x30] sm:$0xff] %v4210_v1  ;;  %v3123_v48 = vadd.f32 %v3122_v2, %v3108_v4  ;;  %v4212_v30 = vadd.f32 %v4181_v5, %v5732_v27  ;;  %v2997_v6 = vpop.f32.mrb[7].mxu0  ;;  %v3111_v56 = vsel %vm3084_vm9, %v4210_v1, 0.0 }
 0x1b6   : > { %3061 = vst [vmem:[%s5747_s10 + $0x20] sm:$0xff] %v4211_v22  ;;  %v3109_v26 = vsel %vm3083_vm8, %v4211_v22, 0.0  ;;  %v4213_v53 = vadd.f32 %v2997_v6, %v5734_v45 }
 0x1b7   : > { %v3124_v51 = vadd.f32 %v3123_v48, %v3109_v26  ;;  %v3146_v63 = vmul.f32 %v3109_v26, %v3109_v26  ;;  %v3160_v27 = vadd.f32 %v3159_v29, %v3145_v32  ;;  %3064 = vst [vmem:[%s5747_s10 + $0x38] sm:$0xff] %v4212_v30 }
 0x1b8   : > { %3062 = vst [vmem:[%s5747_s10 + $0x28] sm:$0xff] %v4213_v53  ;;  %v3110_v24 = vsel %vm3083_vm8, %v4213_v53, 0.0 }
 0x1b9   : > { %v3161_v36 = vadd.f32 %v3160_v27, %v3146_v63  ;;  %v3125_v33 = vadd.f32 %v3124_v51, %v3110_v24  ;;  %v3147_v20 = vmul.f32 %v3110_v24, %v3110_v24 }
 0x1ba   : > { %4526 = shalt.err (!%p4523_p6)
}
 0x1bb   : > { %s4527_s10 = scalar_lea.hbm %s5810_s7, 2048  ;;  %s4531_s4 = scalar_lea.hbm %s5928_s2, 8192 }
 0x1bc   : > { %p4528_p7 = scmp.ne.s32.totalorder %s5810_s7, %s4527_s10  ;;  %p4532_p11 = scmp.lt.u32.totalorder %s5810_s7, %s5928_s2 }
 0x1bd   : > { %p4533_p12 = scmp.lt.u32.totalorder %s4531_s4, %s4527_s10  ;;  %p4535_p0 = scmp.lt.u32.totalorder %s4527_s10, %s5810_s7 }
 0x1be   : > { %p4529_p9 = pnand %p4528_p7, %p4716_p3 }
 0x1bf   : > { %p4534_p13 = por %p4533_p12, %p4532_p11 }
 0x1c0   : > { %p4530_p10 = pneg %p4529_p9 }
 0x1c1   : > { %p4536_p1 = por %p4535_p0, %p4534_p13 }
 0x1c3   : > { %p4537_p2 = pnand %p4536_p1, %p4530_p10 }
 0x1c5   : > { %4540 = shalt.err (!%p4537_p2)
}
 0x1c6   : > { %s4642_s9 = smov 128   ;;  %s4643_s11 = smov 8   ;;  %v3112_v45 = vsel %vm3084_vm9, %v4212_v30, 0.0  ;;  %v3148_v8 = vmul.f32 %v3111_v56, %v3111_v56  ;;  %v3126_v21 = vadd.f32 %v3125_v33, %v3111_v56  ;;  %v3162_v62 = vadd.f32 %v3161_v36, %v3147_v20 }
 0x1c7   : > { %4335 = dma.vmem_to_hbm [thread:$0]  (%p4716_p3), %s5812_s5, 2048, %s5810_s7, %s3183_s8, %s4642_s9, %s4642_s9, %s4643_s11   ;;  %vm3086_vm11 = vcmp.lt.s32.totalorder %v3078_v57, 16  ;;  %v3113_v25 = vsel %vm3085_vm10, %v5745_v54, 0.0  ;;  %v3079_v46 = vadd.s32 6, %v5741_v58  ;;  %v3149_v11 = vmul.f32 %v3112_v45, %v3112_v45 }
 0x1c8   : > { %v3127_v47 = vadd.f32 %v3126_v21, %v3112_v45  ;;  %v3163_v44 = vadd.f32 %v3162_v62, %v3148_v8  ;;  %v3114_v55 = vsel %vm3085_vm10, %v5756_v49, 0.0  ;;  %v3150_v18 = vmul.f32 %v3113_v25, %v3113_v25  ;;  %s3345_s5 = sshll.u32 %s5737_s28, 1  ;;  %s3752_s7 = sshll.u32 %s4627_s16, 1 }
 0x1c9   : > { %v3115_v3 = vsel %vm3086_vm11, %v5743_v39, 0.0  ;;  %v3080_v40 = vadd.s32 7, %v5741_v58  ;;  %v3151_v9 = vmul.f32 %v3114_v55, %v3114_v55  ;;  %vm3087_vm12 = vcmp.lt.s32.totalorder %v3079_v46, 16  ;;  %s3218_s8 = sadd.s32 %s4623_s15, %s3752_s7  ;;  %s190_s21 = scalar_lea.vmem [#allocation4], %s3345_s5 }
 0x1ca   : > { %v3128_v52 = vadd.f32 %v3127_v47, %v3113_v25  ;;  %v3164_v38 = vadd.f32 %v3163_v44, %v3149_v11  ;;  %v3116_v37 = vsel %vm3086_vm11, %v5751_v7, 0.0  ;;  %v3152_v31 = vmul.f32 %v3115_v3, %v3115_v3  ;;  %s3753_s20 = sshll.u32 %s3218_s8, 5  ;;  %s3222_s10 = sshll.u32 %s190_s21, 4  ;;  %s5874_s10 = int_to_ptr.vmem [resolvable:$true] %s3222_s10 }
 0x1cb   : > { %v3117_v49 = vsel %vm3087_vm12, %v5773_v16, 0.0  ;;  %v3153_v61 = vmul.f32 %v3116_v37, %v3116_v37  ;;  %vm3088_vm13 = vcmp.lt.s32.totalorder %v3080_v40, 16  ;;  %v3118_v39 = vsel %vm3087_vm12, %v5793_v42, 0.0  ;;  %s5872_s4 = scalar_lea.hbm %s5929_s3, %s3753_s20  ;;  %s3188_s15 = scalar_lea.sflag [#allocation5], %s5737_s28 }
 0x1cc   : > { %v3165_v54 = vadd.f32 %v3164_v38, %v3150_v18  ;;  %v3129_v50 = vadd.f32 %v3128_v52, %v3114_v55  ;;  %v3154_v41 = vmul.f32 %v3117_v49, %v3117_v49  ;;  %v3119_v15 = vsel %vm3088_vm13, %v5769_v14, 0.0  ;;  %s4541_s16 = scalar_lea.vmem %s5874_s10, 32  ;;  %s4644_s29 = smov [#allocation4]  }
 0x1cd   : > { %v3155_v59 = vmul.f32 %v3118_v39, %v3118_v39  ;;  %v3120_v4 = vsel %vm3088_vm13, %v5786_v23, 0.0  ;;  %v3156_v34 = vmul.f32 %v3119_v15, %v3119_v15  ;;  %vm3179_vm14 = vcmask 1040384   ;;  %p4542_p4 = scmp.ne.s32.totalorder %s5874_s10, %s4541_s16  ;;  %s4545_s6 = sshll.u32 %s4644_s29, 4  ;;  %s4546_s6 = int_to_ptr.vmem [resolvable:$false] %s4545_s6 }
 0x1ce   : > { %v3130_v60 = vadd.f32 %v3129_v50, %v3115_v3  ;;  %v3166_v35 = vadd.f32 %v3165_v54, %v3151_v9  ;;  %v3157_v2 = vmul.f32 %v3120_v4, %v3120_v4  ;;  %s4547_s9 = scalar_lea.vmem %s4546_s6, 64  ;;  %p4548_p7 = scmp.lt.s32.totalorder %s5874_s10, %s4546_s6 }
 0x1cf   : > { %p4543_p5 = pnand %p4542_p4, %p4716_p3  ;;  %p4549_p9 = scmp.lt.s32.totalorder %s4547_s9, %s4541_s16 }
 0x1d0   : > { %v3131_v43 = vadd.f32 %v3130_v60, %v3116_v37  ;;  %v3167_v17 = vadd.f32 %v3166_v35, %v3152_v31 }
 0x1d1   : > { %p4544_p6 = pneg %p4543_p5  ;;  %p4550_p10 = por %p4549_p9, %p4548_p7 }
 0x1d2   : > { %v3132_v58 = vadd.f32 %v3131_v43, %v3117_v49  ;;  %v3168_v10 = vadd.f32 %v3167_v17, %v3153_v61 }
 0x1d3   : > { %p4551_p11 = pnand %p4550_p10, %p4544_p6 }
 0x1d4   : > { %v3133_v13 = vadd.f32 %v3132_v58, %v3118_v39  ;;  %v3169_v7 = vadd.f32 %v3168_v10, %v3154_v41 }
 0x1d6   : > { %v3134_v16 = vadd.f32 %v3133_v13, %v3119_v15  ;;  %v3170_v0 = vadd.f32 %v3169_v7, %v3155_v59 }
 0x1d8   : > { %v3135_v28 = vadd.f32 %v3134_v16, %v3120_v4  ;;  %v3171_v1 = vadd.f32 %v3170_v0, %v3156_v34 }
 0x1da   : > { %v3136_v42 = vrot.slane %v3135_v28, 4  ;;  %v3172_v12 = vadd.f32 %v3171_v1, %v3157_v2 }
 0x1dc   : > { %v3137_v19 = vadd.f32 %v3136_v42, %v3135_v28  ;;  %v3173_v22 = vrot.slane %v3172_v12, 4 }
 0x1de   : > { %v3138_v5 = vrot.slane %v3137_v19, 2  ;;  %v3174_v14 = vadd.f32 %v3173_v22, %v3172_v12 }
 0x1e0   : > { %v3139_v32 = vadd.f32 %v3138_v5, %v3137_v19  ;;  %v3175_v29 = vrot.slane %v3174_v14, 2 }
 0x1e2   : > { %v3140_v23 = vrot.slane %v3139_v32, 1  ;;  %v3176_v48 = vadd.f32 %v3175_v29, %v3174_v14 }
 0x1e4   : > { %v3177_v30 = vrot.slane %v3176_v48, 1  ;;  %v3141_v6 = vadd.f32 %v3140_v23, %v3139_v32 }
 0x1e6   : > { %v3178_v26 = vadd.f32 %v3177_v30, %v3176_v48 }
 0x1e8   : > { %v3180_v53 = vsel %vm3179_vm14, %v3141_v6, %v3178_v26 }
 0x1e9   : > { %3181 = vst [vmem:[%s190_s21] sm:$0x3] %v3180_v53 }
 0x1ea   : > { %4554 = shalt.err (!%p4551_p11)
}
 0x1eb   : > { %s4555_s28 = scalar_lea.hbm %s5872_s4, 32  ;;  %s4559_s7 = scalar_lea.hbm %s5929_s3, 128 }
 0x1ec   : > { %p4556_p12 = scmp.ne.s32.totalorder %s5872_s4, %s4555_s28  ;;  %p4560_p1 = scmp.lt.u32.totalorder %s5872_s4, %s5929_s3 }
 0x1ed   : > { %p4561_p2 = scmp.lt.u32.totalorder %s4559_s7, %s4555_s28  ;;  %p4563_p5 = scmp.lt.u32.totalorder %s4555_s28, %s5872_s4 }
 0x1ee   : > { %p4557_p13 = pnand %p4556_p12, %p4716_p3 }
 0x1ef   : > { %p4562_p4 = por %p4561_p2, %p4560_p1 }
 0x1f0   : > { %p4558_p0 = pneg %p4557_p13 }
 0x1f1   : > { %p4564_p6 = por %p4563_p5, %p4562_p4 }
 0x1f3   : > { %p4565_p7 = pnand %p4564_p6, %p4558_p0 }
 0x1f5   : > { %4568 = shalt.err (!%p4565_p7)
}
 0x1f6   : > { %4336 = dma.vmem_to_hbm [thread:$0]  (%p4716_p3), %s5874_s10, 32, %s5872_s4, %s3188_s15  }
 0x1f7 PF: > { %p4346_p9 = scmp.ge.s32.totalorder %s4639_s19, 2  ;;  %s3234_s21 = sand.u32 1, %s4611_s12  }
 0x1f8   : > { %s3235_s24 = scalar_lea.sflag [#allocation3], %s3234_s21 }
 0x1f9   : > { %p4340_p10 = pnand %p4346_p9, %p4725_p8 }
 0x1fb   : > { %4602 = dma.done.wait (!%p4340_p10), %s3235_s24, 2048  }
 0x1fc   : > { %4604 = vsyncadd (!%p4340_p10), %s3235_s24, 4294965248  ;;  %s3244_s27 = scalar_lea.sflag [#allocation5], %s3234_s21 }
 0x1fd   : > { %4606 = dma.done.wait (!%p4340_p10), %s3244_s27, 32  }
 0x1fe   : > { %4608 = vsyncadd (!%p4340_p10), %s3244_s27, 4294967264  ;;  %s20_s19 = sadd.s32 1, %s4639_s19   ;;  %s5945_s12 = smov %s4615_s13 }
 0x1ff   : > { %p17_p11 = scmp.ge.s32.totalorder %s20_s19, 6   ;;  %s5946_s13 = smov %s4619_s14 }
 0x200   : > { %s5947_s14 = smov %s4734_s30  ;;  %s5948_s15 = smov %s4631_s17 }
 0x201   : > { %s5949_s16 = smov %s4635_s18  ;;  %s5950_s17 = smov %s5953_s22 }
 0x202   : > { %s5951_s18 = smov %s5957_s23  ;;  %19 = sbr.rel (!%p17_p11) target bundleno = 7 (0x7), region = 91 }
 0x209   :  { %3249 = vsyncpa [#allocation3], 1 }
 0x20a   :  { %3251 = vsyncpa [#allocation3 + $0x1], 1 }
 0x20b   :  { %3252 = vsyncpa [#allocation5], 1 }
 0x20c   :  { %3254 = vsyncpa [#allocation5 + $0x1], 1 }

</bundles_post_ra>
